<compile_context>
chip_gen: v6e
topology: v6e:2x2x1
jax: 0.10.0
libtpu: 0.0.40
codegen_flags: <defaults>
</compile_context>

<pallas_src>
import functools
import math

import jax
import jax.numpy as jnp
from jax.experimental import pallas as pl
from jax.experimental.pallas import tpu as pltpu

LN_EPS = 1e-12  # config.layer_norm_eps


# ----------------------------------------------------------------------------------
# small shared helpers (pure jnp -> usable both inside kernels and in the reference)
# ----------------------------------------------------------------------------------
def _layer_norm(x, gamma, beta):
    # single-pass statistics (one sweep); clamp variance against cancellation
    d = x.shape[-1]
    s1 = jnp.sum(x, axis=-1, keepdims=True)
    s2 = jnp.sum(x * x, axis=-1, keepdims=True)
    mean = s1 / d
    var = jnp.maximum(s2 / d - mean * mean, 0.0)
    return (x - mean) * jax.lax.rsqrt(var + LN_EPS) * gamma + beta


def _gelu_new(x):
    return 0.5 * x * (1.0 + jnp.tanh(math.sqrt(2.0 / math.pi)
                                     * (x + 0.044715 * x * x * x)))


# ----------------------------------------------------------------------------------
# 1. AlbertEmbeddings : word/position/token-type embeddings + LayerNorm
#    word gather = per-row DMA from the HBM-resident table (ids prefetched in SMEM),
#    drained with ONE bulk wait; position emb = plain table slice (ids == arange);
#    token-type emb = VPU select over the tiny type table.
# ----------------------------------------------------------------------------------
def _albert_embeddings_kernel(ids_smem, tok_ref, pos_ref, tok_tab_ref,
                              gamma_ref, beta_ref, word_hbm, out_ref,
                              wbuf, sem):
    b = pl.program_id(0)
    st = pl.program_id(1)
    tile = wbuf.shape[0]
    vocab = word_hbm.shape[0]
    base = (b * pl.num_programs(1) + st) * tile

    # issue all row DMAs on one semaphore (ids live in SMEM via scalar prefetch)
    @pl.loop(0, tile)
    def _issue(r):
        idx = jnp.clip(ids_smem[base + r], 0, vocab - 1)   # clamp -> no OOB reads
        pltpu.make_async_copy(word_hbm.at[pl.ds(idx, 1)],
                              wbuf.at[pl.ds(r, 1)],
                              sem.at[0]).start()

    # single bulk wait: descriptor byte count == tile rows == total issued bytes
    pltpu.make_async_copy(word_hbm.at[pl.ds(0, tile)], wbuf, sem.at[0]).wait()

    # positions == arange -> the position embedding is just a table slice
    emb = wbuf[...] + pos_ref[...]                       # (tile, E) f32

    # token-type embedding: VPU select over a tiny table (no matmul)
    tok = tok_ref[0]                                     # (tile, 1) int32
    for t in range(tok_tab_ref.shape[0]):                # static, T == 2
        emb = emb + jnp.where(tok == t, tok_tab_ref[t:t + 1, :], 0.0)

    out = _layer_norm(emb, gamma_ref[...], beta_ref[...])
    out_ref[0] = out.astype(out_ref.dtype)               # dropout = identity (eval)


def albert_embeddings(input_ids, token_type_ids, word_table, pos_table, tok_table,
                      gamma, beta, *, out_dtype=jnp.float32, max_tile=256):
    """position_ids = arange(S) (the module's default when position_ids is None)."""
    B, S = input_ids.shape
    V, E = word_table.shape
    tile = S if S <= max_tile else max_tile
    assert S % tile == 0 and (tile % 8 == 0 or tile == S)
    n_st = S // tile

    ids_flat = input_ids.reshape(B * S).astype(jnp.int32)        # -> SMEM prefetch
    tok3 = token_type_ids.astype(jnp.int32)[..., None]           # (B, S, 1)
    gamma2 = gamma.reshape(1, E).astype(jnp.float32)
    beta2 = beta.reshape(1, E).astype(jnp.float32)

    return pl.pallas_call(
        _albert_embeddings_kernel,
        out_shape=jax.ShapeDtypeStruct((B, S, E), out_dtype),
        grid_spec=pltpu.PrefetchScalarGridSpec(
            num_scalar_prefetch=1,
            grid=(B, n_st),
            in_specs=[
                pl.BlockSpec((1, tile, 1), lambda b, st, ids: (b, st, 0)),  # token types
                pl.BlockSpec((tile, E), lambda b, st, ids: (st, 0)),        # pos slice
                pl.BlockSpec(tok_table.shape, lambda b, st, ids: (0, 0)),   # type table
                pl.BlockSpec((1, E), lambda b, st, ids: (0, 0)),            # LN gamma
                pl.BlockSpec((1, E), lambda b, st, ids: (0, 0)),            # LN beta
                pl.BlockSpec(memory_space=pl.ANY),                          # word table (HBM)
            ],
            out_specs=pl.BlockSpec((1, tile, E), lambda b, st, ids: (b, st, 0)),
            scratch_shapes=[pltpu.VMEM((tile, E), jnp.float32),
                            pltpu.SemaphoreType.DMA((1,))],
        ),
        compiler_params=pltpu.CompilerParams(
            dimension_semantics=("parallel", "parallel")),
    )(ids_flat, tok3, pos_table.astype(jnp.float32), tok_table.astype(jnp.float32),
      gamma2, beta2, word_table.astype(jnp.float32))


# ----------------------------------------------------------------------------------
# 2. embedding_hidden_mapping_in (E -> H), bf16 matmul operands / f32 accumulation
# ----------------------------------------------------------------------------------
def _dense_kernel(x_ref, w_ref, b_ref, o_ref):
    o_ref[0] = (jnp.dot(x_ref[0].astype(jnp.bfloat16), w_ref[...],
                        preferred_element_type=jnp.float32)
                + b_ref[...]).astype(o_ref.dtype)


def dense_3d(x, w, b):
    B, S, E = x.shape
    H = w.shape[1]
    return pl.pallas_call(
        _dense_kernel,
        out_shape=jax.ShapeDtypeStruct((B, S, H), jnp.float32),
        grid=(B,),
        in_specs=[pl.BlockSpec((1, S, E), lambda i: (i, 0, 0)),
                  pl.BlockSpec((E, H), lambda i: (0, 0)),
                  pl.BlockSpec((1, H), lambda i: (0, 0))],
        out_specs=pl.BlockSpec((1, S, H), lambda i: (i, 0, 0)),
        compiler_params=pltpu.CompilerParams(dimension_semantics=("parallel",)),
    )(x, w.astype(jnp.bfloat16), b.reshape(1, H).astype(jnp.float32))


# ----------------------------------------------------------------------------------
# 3. AlbertLayer stack, fused: grid = (batch, layer). ALBERT shares one weight set,
#    so the constant-index weight specs are DMA'd once and the hidden state is
#    carried across layers in VMEM scratch.
# ----------------------------------------------------------------------------------
def _albert_layers_kernel(h_ref, mask_ref, wqkv_ref, bqkv_ref, wo_ref, bo_ref,
                          g1_ref, b1_ref, wi_ref, bi_ref, wo2_ref, bo2_ref,
                          g2_ref, b2_ref, o_ref, x_scr, *, num_heads):
    l = pl.program_id(1)

    @pl.when(l == 0)
    def _():                                   # load this batch element's hidden state
        x_scr[...] = h_ref[0].astype(jnp.float32)

    x = x_scr[...]                             # (S, H) f32 carried state
    S, H = x.shape
    dh = H // num_heads
    scale = 1.0 / math.sqrt(dh)
    mask = mask_ref[0]                         # (1, S) additive mask, f32

    # ---- self-attention: fused lane-dense QKV projection (bf16 in / f32 acc) ----
    xb = x.astype(jnp.bfloat16)
    qkv = jnp.dot(xb, wqkv_ref[...], preferred_element_type=jnp.float32) + bqkv_ref[...]
    q, k, v = qkv[:, :H], qkv[:, H:2 * H], qkv[:, 2 * H:]

    ctx_parts = []
    for hd in range(num_heads):                # per-head only for the score/ctx matmuls
        lo = hd * dh
        qh = q[:, lo:lo + dh].astype(jnp.bfloat16)
        kh = k[:, lo:lo + dh].astype(jnp.bfloat16)
        vh = v[:, lo:lo + dh].astype(jnp.bfloat16)
        scores = jax.lax.dot_general(qh, kh, (((1,), (1,)), ((), ())),
                                     preferred_element_type=jnp.float32) * scale + mask
        m = jnp.max(scores, axis=-1, keepdims=True)
        p = jnp.exp(scores - m)
        p = p * pl.reciprocal(jnp.sum(p, axis=-1, keepdims=True), approx=True)
        ctx_parts.append(jnp.dot(p.astype(jnp.bfloat16), vh,
                                 preferred_element_type=jnp.float32))
    ctx = jnp.concatenate(ctx_parts, axis=-1)  # (S, H)

    # single lane-dense output projection
    attn = jnp.dot(ctx.astype(jnp.bfloat16), wo_ref[...],
                   preferred_element_type=jnp.float32) + bo_ref[...]
    x1 = _layer_norm(attn + x, g1_ref[...], b1_ref[...])

    # ---- FFN (gelu_new) ----
    inter = _gelu_new(jnp.dot(x1.astype(jnp.bfloat16), wi_ref[...],
                              preferred_element_type=jnp.float32) + bi_ref[...])
    ffn = jnp.dot(inter.astype(jnp.bfloat16), wo2_ref[...],
                  preferred_element_type=jnp.float32) + bo2_ref[...]
    x2 = _layer_norm(ffn + x1, g2_ref[...], b2_ref[...])

    x_scr[...] = x2                            # carry to next layer
    o_ref[0] = x2.astype(o_ref.dtype)          # written back to HBM only when b changes


def albert_layers(h, ext_mask3, lp, *, num_heads, num_layers):
    B, S, H = h.shape
    I = lp['wi'].shape[1]

    # fuse Q|K|V weights into one (H, 3H) bf16 matrix; biases stay f32
    wqkv = jnp.concatenate([lp['wq'], lp['wk'], lp['wv']], axis=1).astype(jnp.bfloat16)
    bqkv = jnp.concatenate([lp['bq'], lp['bk'], lp['bv']], axis=0).reshape(1, 3 * H)
    wo = lp['wo'].astype(jnp.bfloat16)
    wi = lp['wi'].astype(jnp.bfloat16)
    wo2 = lp['wo2'].astype(jnp.bfloat16)
    bo = lp['bo'].reshape(1, H)
    bi = lp['bi'].reshape(1, I)
    bo2 = lp['bo2'].reshape(1, H)
    g1 = lp['g1'].reshape(1, H)
    b1 = lp['b1'].reshape(1, H)
    g2 = lp['g2'].reshape(1, H)
    b2 = lp['b2'].reshape(1, H)

    def wspec(shape):
        return pl.BlockSpec(shape, lambda b, l, _n=len(shape): (0,) * _n)

    kern = functools.partial(_albert_layers_kernel, num_heads=num_heads)
    return pl.pallas_call(
        kern,
        out_shape=jax.ShapeDtypeStruct((B, S, H), jnp.float32),
        grid=(B, num_layers),
        in_specs=[pl.BlockSpec((1, S, H), lambda b, l: (b, 0, 0)),   # hidden (per batch)
                  pl.BlockSpec((1, 1, S), lambda b, l: (b, 0, 0)),   # additive mask
                  wspec((H, 3 * H)), wspec((1, 3 * H)),              # fused QKV
                  wspec((H, H)), wspec((1, H)),                      # output proj
                  wspec((1, H)), wspec((1, H)),                      # LN1
                  wspec((H, I)), wspec((1, I)),                      # FFN in
                  wspec((I, H)), wspec((1, H)),                      # FFN out
                  wspec((1, H)), wspec((1, H))],                     # LN2
        out_specs=pl.BlockSpec((1, S, H), lambda b, l: (b, 0, 0)),
        scratch_shapes=[pltpu.VMEM((S, H), jnp.float32)],            # carried hidden state
        compiler_params=pltpu.CompilerParams(
            dimension_semantics=("parallel", "arbitrary"),
            vmem_limit_bytes=48 * 1024 * 1024),
    )(h, ext_mask3, wqkv, bqkv, wo, bo, g1, b1, wi, bi, wo2, bo2, g2, b2)


# ----------------------------------------------------------------------------------
# 4. AlbertPooler (first-token dense + tanh); first-token slice done in the wrapper
# ----------------------------------------------------------------------------------
def _pooler_kernel(h0_ref, w_ref, b_ref, o_ref):
    o_ref[...] = jnp.tanh(
        jnp.dot(h0_ref[...].astype(jnp.bfloat16), w_ref[...],
                preferred_element_type=jnp.float32) + b_ref[...])


def albert_pooler(h0, w, b):
    B, H = h0.shape
    return pl.pallas_call(
        _pooler_kernel,
        out_shape=jax.ShapeDtypeStruct((B, H), jnp.float32),
        grid=(1,),
        in_specs=[pl.BlockSpec((B, H), lambda i: (0, 0)),
                  pl.BlockSpec((H, H), lambda i: (0, 0)),
                  pl.BlockSpec((1, H), lambda i: (0, 0))],
        out_specs=pl.BlockSpec((B, H), lambda i: (0, 0)),
        compiler_params=pltpu.CompilerParams(dimension_semantics=("arbitrary",)),
    )(h0, w.astype(jnp.bfloat16), b.reshape(1, H).astype(jnp.float32))


# ----------------------------------------------------------------------------------
# full AlbertModel forward (eval mode)
# ----------------------------------------------------------------------------------
def albert_model(input_ids, attention_mask, token_type_ids, params, *, num_heads,
                 num_hidden_layers):
    B, S = input_ids.shape
    E = params['word'].shape[1]
    H = params['map_w'].shape[1]

    emb = albert_embeddings(input_ids, token_type_ids,
                            params['word'], params['pos'], params['tok'],
                            params['emb_g'], params['emb_b'])
    h = dense_3d(emb, params['map_w'], params['map_b']) if E != H else emb

    ext = ((1.0 - attention_mask.astype(jnp.float32)) * -10000.0).reshape(B, 1, S)
    h = albert_layers(h, ext, params['layer'],
                      num_heads=num_heads, num_layers=num_hidden_layers)

    pooled = albert_pooler(h[:, 0, :], params['pool_w'], params['pool_b'])
    return h, pooled


# ----------------------------------------------------------------------------------
# pure-jnp f32 reference (spec semantics)
# ----------------------------------------------------------------------------------
def _reference_model(input_ids, attention_mask, token_type_ids, params, *, num_heads,
                     num_hidden_layers):
    B, S = input_ids.shape
    E = params['word'].shape[1]
    H = params['map_w'].shape[1]
    nh = num_heads
    dh = H // nh

    x = (params['word'][input_ids] + params['pos'][:S][None]
         + params['tok'][token_type_ids])
    x = _layer_norm(x, params['emb_g'], params['emb_b'])
    h = x @ params['map_w'] + params['map_b'] if E != H else x

    ext = (1.0 - attention_mask.astype(jnp.float32)) * -10000.0      # (B, S)
    lp = params['layer']
    for _ in range(num_hidden_layers):
        q = (h @ lp['wq'] + lp['bq']).reshape(B, S, nh, dh).transpose(0, 2, 1, 3)
        k = (h @ lp['wk'] + lp['bk']).reshape(B, S, nh, dh).transpose(0, 2, 1, 3)
        v = (h @ lp['wv'] + lp['bv']).reshape(B, S, nh, dh).transpose(0, 2, 1, 3)
        s = jnp.einsum('bnsd,bntd->bnst', q, k) / math.sqrt(dh) + ext[:, None, None, :]
        p = jax.nn.softmax(s, axis=-1)
        ctx = jnp.einsum('bnst,bntd->bnsd', p, v).transpose(0, 2, 1, 3).reshape(B, S, H)
        attn = ctx @ lp['wo'] + lp['bo']
        x1 = _layer_norm(attn + h, lp['g1'], lp['b1'])
        inter = _gelu_new(x1 @ lp['wi'] + lp['bi'])
        h = _layer_norm(inter @ lp['wo2'] + lp['bo2'] + x1, lp['g2'], lp['b2'])
    pooled = jnp.tanh(h[:, 0] @ params['pool_w'] + params['pool_b'])
    return h, pooled


if __name__ == "__main__":
    # Small ALBERT-like config
    vocab_size = 128
    embedding_size = 32
    hidden_size = 64
    num_attention_heads = 4
    intermediate_size = 128
    max_position_embeddings = 64
    type_vocab_size = 2
    num_hidden_layers = 2          # 1 hidden group -> shared weights across layers
    B, S = 2, 8

    keys = iter(jax.random.split(jax.random.PRNGKey(0), 32))

    def nrm(shape, scale=0.02):
        return scale * jax.random.normal(next(keys), shape, jnp.float32)

    params = {
        'word': nrm((vocab_size, embedding_size)).at[0].set(0.0),   # padding_idx=0
        'pos': nrm((max_position_embeddings, embedding_size)),
        'tok': nrm((type_vocab_size, embedding_size)),
        'emb_g': jnp.ones((embedding_size,), jnp.float32),
        'emb_b': jnp.zeros((embedding_size,), jnp.float32),
        'map_w': nrm((embedding_size, hidden_size)),
        'map_b': nrm((hidden_size,)),
        'layer': {
            'wq': nrm((hidden_size, hidden_size)), 'bq': nrm((hidden_size,)),
            'wk': nrm((hidden_size, hidden_size)), 'bk': nrm((hidden_size,)),
            'wv': nrm((hidden_size, hidden_size)), 'bv': nrm((hidden_size,)),
            'wo': nrm((hidden_size, hidden_size)), 'bo': nrm((hidden_size,)),
            'g1': jnp.ones((hidden_size,), jnp.float32),
            'b1': jnp.zeros((hidden_size,), jnp.float32),
            'wi': nrm((hidden_size, intermediate_size)),
            'bi': nrm((intermediate_size,)),
            'wo2': nrm((intermediate_size, hidden_size)),
            'bo2': nrm((hidden_size,)),
            'g2': jnp.ones((hidden_size,), jnp.float32),
            'b2': jnp.zeros((hidden_size,), jnp.float32),
        },
        'pool_w': nrm((hidden_size, hidden_size)),
        'pool_b': nrm((hidden_size,)),
    }

    input_ids = jax.random.randint(next(keys), (B, S), 1, vocab_size, dtype=jnp.int32)
    input_ids = input_ids.at[1, -1].set(0)                         # padding token
    token_type_ids = jax.random.randint(next(keys), (B, S), 0, type_vocab_size,
                                        dtype=jnp.int32)
    attention_mask = jnp.ones((B, S), jnp.int32).at[1, -1].set(0)  # mask the pad slot

    model = jax.jit(functools.partial(albert_model,
                                      num_heads=num_attention_heads,
                                      num_hidden_layers=num_hidden_layers))
    seq_out, pooled = model(input_ids, attention_mask, token_type_ids, params)
    seq_out = jax.block_until_ready(seq_out)
    pooled = jax.block_until_ready(pooled)

    ref_seq, ref_pool = _reference_model(input_ids, attention_mask, token_type_ids,
                                         params, num_heads=num_attention_heads,
                                         num_hidden_layers=num_hidden_layers)

    assert seq_out.shape == (B, S, hidden_size)
    assert pooled.shape == (B, hidden_size)
    assert jnp.allclose(seq_out, ref_seq, rtol=2e-2, atol=2e-2), (
        "sequence mismatch, max diff %.4g" % float(jnp.max(jnp.abs(seq_out - ref_seq))))
    assert jnp.allclose(pooled, ref_pool, rtol=2e-2, atol=2e-2), (
        "pooled mismatch, max diff %.4g" % float(jnp.max(jnp.abs(pooled - ref_pool))))

    print("KERNEL_OK")
</pallas_src>

<mosaic_0001>
module attributes {stable_mosaic.version = 11 : i64} {
  func.func @_dense_kernel(%arg0: i32, %arg1: memref<1x8x32xf32, #tpu.memory_space<vmem>>, %arg2: memref<32x64xbf16, #tpu.memory_space<vmem>>, %arg3: memref<1x64xf32, #tpu.memory_space<vmem>>, %arg4: memref<1x8x64xf32, #tpu.memory_space<vmem>>) attributes {dimension_semantics = [#tpu.dimension_semantics<parallel>], iteration_bounds = array<i64: 2>, scalar_prefetch = 0 : i64, scratch_operands = 0 : i64, tpu.core_type = #tpu.core_type<tc>, window_params = [{transform_indices = @transform_0, window_bounds = array<i64: 1, 8, 32>}, {pipeline_mode = #tpu.pipeline_mode<synchronous>, transform_indices = @transform_1, window_bounds = array<i64: 32, 64>}, {pipeline_mode = #tpu.pipeline_mode<synchronous>, transform_indices = @transform_2, window_bounds = array<i64: 1, 64>}, {transform_indices = @transform_3, window_bounds = array<i64: 1, 8, 64>}]} {
    %c0 = arith.constant 0 : index
    %c0_0 = arith.constant 0 : index
    %c0_1 = arith.constant 0 : index
    %0 = vector.load %arg1[%c0, %c0_0, %c0_1] : memref<1x8x32xf32, #tpu.memory_space<vmem>>, vector<1x8x32xf32>
    %1 = vector.shape_cast %0 : vector<1x8x32xf32> to vector<8x32xf32>
    %2 = arith.truncf %1 : vector<8x32xf32> to vector<8x32xbf16>
    %c0_2 = arith.constant 0 : index
    %c0_3 = arith.constant 0 : index
    %3 = vector.load %arg2[%c0_2, %c0_3] : memref<32x64xbf16, #tpu.memory_space<vmem>>, vector<32x64xbf16>
    %cst = arith.constant dense<0.000000e+00> : vector<8x64xf32>
    %4 = tpu.matmul %2, %3, %cst {dimension_numbers = #tpu.dot_dimension_numbers<[1], [0], [0], [1], [0, 0, 1, 1], [], []>} : vector<8x32xbf16>, vector<32x64xbf16>, vector<8x64xf32> -> vector<8x64xf32>
    %c0_4 = arith.constant 0 : index
    %c0_5 = arith.constant 0 : index
    %5 = vector.load %arg3[%c0_4, %c0_5] : memref<1x64xf32, #tpu.memory_space<vmem>>, vector<1x64xf32>
    %6 = vector.broadcast %5 : vector<1x64xf32> to vector<8x64xf32>
    %7 = arith.addf %4, %6 : vector<8x64xf32>
    %c0_6 = arith.constant 0 : index
    %c0_7 = arith.constant 0 : index
    %c0_8 = arith.constant 0 : index
    %8 = vector.load %arg4[%c0_6, %c0_7, %c0_8] : memref<1x8x64xf32, #tpu.memory_space<vmem>>, vector<1x8x64xf32>
    %9 = vector.shape_cast %8 : vector<1x8x64xf32> to vector<8x64xf32>
    %10 = vector.shape_cast %7 : vector<8x64xf32> to vector<1x8x64xf32>
    tpu.vector_store %arg4[%c0_6, %c0_7, %c0_8], %10 {strides = array<i32>} : memref<1x8x64xf32, #tpu.memory_space<vmem>>, vector<1x8x64xf32>,
    return
  }
  func.func @transform_0(%arg0: i32) -> (i32, i32, i32) {
    %c0_i32 = arith.constant 0 : i32
    %c0_i32_0 = arith.constant 0 : i32
    %c0_i32_1 = arith.constant 0 : i32
    return %arg0, %c0_i32, %c0_i32_0 : i32, i32, i32
  }
  func.func @transform_1(%arg0: i32) -> (i32, i32) {
    %c0_i32 = arith.constant 0 : i32
    %c0_i32_0 = arith.constant 0 : i32
    %c0_i32_1 = arith.constant 0 : i32
    return %c0_i32, %c0_i32_0 : i32, i32
  }
  func.func @transform_2(%arg0: i32) -> (i32, i32) {
    %c0_i32 = arith.constant 0 : i32
    %c0_i32_0 = arith.constant 0 : i32
    %c0_i32_1 = arith.constant 0 : i32
    return %c0_i32, %c0_i32_0 : i32, i32
  }
  func.func @transform_3(%arg0: i32) -> (i32, i32, i32) {
    %c0_i32 = arith.constant 0 : i32
    %c0_i32_0 = arith.constant 0 : i32
    %c0_i32_1 = arith.constant 0 : i32
    return %arg0, %c0_i32, %c0_i32_0 : i32, i32, i32
  }
}

module attributes {stable_mosaic.version = 11 : i64} {
  func.func @_albert_embeddings_kernel(%arg0: i32, %arg1: i32, %arg2: memref<16xi32, #tpu.memory_space<smem>>, %arg3: memref<1x8x1xi32, #tpu.memory_space<vmem>>, %arg4: memref<8x32xf32, #tpu.memory_space<vmem>>, %arg5: memref<2x32xf32, #tpu.memory_space<vmem>>, %arg6: memref<1x32xf32, #tpu.memory_space<vmem>>, %arg7: memref<1x32xf32, #tpu.memory_space<vmem>>, %arg8: memref<128x32xf32, #tpu.memory_space<any>>, %arg9: memref<1x8x32xf32, #tpu.memory_space<vmem>>, %arg10: memref<8x32xf32, #tpu.memory_space<vmem>>, %arg11: memref<1x!tpu.dma_semaphore, #tpu.memory_space<semaphore_mem>>) attributes {dimension_semantics = [#tpu.dimension_semantics<parallel>, #tpu.dimension_semantics<parallel>], iteration_bounds = array<i64: 2, 1>, scalar_prefetch = 1 : i64, scratch_operands = 2 : i64, tpu.core_type = #tpu.core_type<tc>, window_params = [{transform_indices = @transform_0, window_bounds = array<i64: 1, 8, 1>}, {transform_indices = @transform_1, window_bounds = array<i64: 8, 32>}, {pipeline_mode = #tpu.pipeline_mode<synchronous>, transform_indices = @transform_2, window_bounds = array<i64: 2, 32>}, {pipeline_mode = #tpu.pipeline_mode<synchronous>, transform_indices = @transform_3, window_bounds = array<i64: 1, 32>}, {pipeline_mode = #tpu.pipeline_mode<synchronous>, transform_indices = @transform_4, window_bounds = array<i64: 1, 32>}, {}, {transform_indices = @transform_6, window_bounds = array<i64: 1, 8, 32>}]} {
    %c1_i32 = arith.constant 1 : i32
    %0 = arith.muli %arg0, %c1_i32 : i32
    %1 = arith.addi %0, %arg1 : i32
    %c8_i32 = arith.constant 8 : i32
    %2 = arith.muli %1, %c8_i32 : i32
    %c0_i32 = arith.constant 0 : i32
    %c8_i32_0 = arith.constant 8 : i32
    %3 = arith.addi %c0_i32, %c8_i32_0 : i32
    %c1_i32_1 = arith.constant 1 : i32
    scf.for %arg12 = %c0_i32 to %3 step %c1_i32_1  : i32 {
      %c1_i32_31 = arith.constant 1 : i32
      %61 = arith.muli %arg12, %c1_i32_31 : i32
      %c0_i32_32 = arith.constant 0 : i32
      %62 = arith.addi %c0_i32_32, %61 : i32
      %63 = arith.addi %2, %62 : i32
      %64 = arith.index_cast %63 : i32 to index
      %65 = memref.load %arg2[%64] : memref<16xi32, #tpu.memory_space<smem>>
      %c0_i32_33 = arith.constant 0 : i32
      %c127_i32 = arith.constant 127 : i32
      %66 = arith.maxsi %c0_i32_33, %65 : i32
      %67 = arith.minsi %c127_i32, %66 : i32
      %c0_i32_34 = arith.constant 0 : i32
      %c0_i32_35 = arith.constant 0 : i32
      %68 = tpu.memref_slice %arg8[%67, %c0_i32_35] : memref<128x32xf32, #tpu.memory_space<any>> -> memref<1x32xf32, #tpu.memory_space<any>>
      %c0_i32_36 = arith.constant 0 : i32
      %69 = tpu.memref_slice %arg10[%62, %c0_i32_36] : memref<8x32xf32, #tpu.memory_space<vmem>> -> memref<1x32xf32, #tpu.memory_space<vmem>>
      %70 = tpu.memref_slice %arg11[%c0_i32_34] : memref<1x!tpu.dma_semaphore, #tpu.memory_space<semaphore_mem>> -> memref<1x!tpu.dma_semaphore, #tpu.memory_space<semaphore_mem>>
      %71 = tpu.memref_squeeze %70 : memref<1x!tpu.dma_semaphore, #tpu.memory_space<semaphore_mem>> -> memref<!tpu.dma_semaphore, #tpu.memory_space<semaphore_mem>>
      tpu.enqueue_dma source(%68 : memref<1x32xf32, #tpu.memory_space<any>>) target(%69 : memref<1x32xf32, #tpu.memory_space<vmem>>) target_semaphore(%71 : memref<!tpu.dma_semaphore, #tpu.memory_space<semaphore_mem>>)
    }
    %c8_i32_2 = arith.constant 8 : i32
    %c0_i32_3 = arith.constant 0 : i32
    %c0_i32_4 = arith.constant 0 : i32
    %c0_i32_5 = arith.constant 0 : i32
    %4 = tpu.memref_slice %arg8[%c0_i32_4, %c0_i32_5] : memref<128x32xf32, #tpu.memory_space<any>> -> memref<8x32xf32, #tpu.memory_space<any>>
    %5 = tpu.memref_slice %arg11[%c0_i32_3] : memref<1x!tpu.dma_semaphore, #tpu.memory_space<semaphore_mem>> -> memref<1x!tpu.dma_semaphore, #tpu.memory_space<semaphore_mem>>
    %6 = tpu.memref_squeeze %5 : memref<1x!tpu.dma_semaphore, #tpu.memory_space<semaphore_mem>> -> memref<!tpu.dma_semaphore, #tpu.memory_space<semaphore_mem>>
    tpu.wait_dma2 semaphore(%6 : memref<!tpu.dma_semaphore, #tpu.memory_space<semaphore_mem>>) src(%4 : memref<8x32xf32, #tpu.memory_space<any>>) dst(%arg10 : memref<8x32xf32, #tpu.memory_space<vmem>>)
    %c0 = arith.constant 0 : index
    %c0_6 = arith.constant 0 : index
    %7 = vector.load %arg10[%c0, %c0_6] : memref<8x32xf32, #tpu.memory_space<vmem>>, vector<8x32xf32>
    %c0_7 = arith.constant 0 : index
    %c0_8 = arith.constant 0 : index
    %8 = vector.load %arg4[%c0_7, %c0_8] : memref<8x32xf32, #tpu.memory_space<vmem>>, vector<8x32xf32>
    %9 = arith.addf %7, %8 : vector<8x32xf32>
    %c0_9 = arith.constant 0 : index
    %c0_10 = arith.constant 0 : index
    %c0_11 = arith.constant 0 : index
    %10 = vector.load %arg3[%c0_9, %c0_10, %c0_11] : memref<1x8x1xi32, #tpu.memory_space<vmem>>, vector<1x8x1xi32>
    %11 = vector.shape_cast %10 : vector<1x8x1xi32> to vector<8x1xi32>
    %c0_i32_12 = arith.constant 0 : i32
    %12 = vector.broadcast %c0_i32_12 : i32 to vector<8x1xi32>
    %13 = arith.cmpi eq, %11, %12 : vector<8x1xi32>
    %c0_13 = arith.constant 0 : index
    %c0_14 = arith.constant 0 : index
    %14 = vector.load %arg5[%c0_13, %c0_14] : memref<2x32xf32, #tpu.memory_space<vmem>>, vector<1x32xf32>
    %cst = arith.constant 0.000000e+00 : f32
    %15 = vector.shape_cast %13 : vector<8x1xi1> to vector<8x1xi1>
    %16 = vector.broadcast %15 : vector<8x1xi1> to vector<8x32xi1>
    %17 = vector.shape_cast %14 : vector<1x32xf32> to vector<1x32xf32>
    %18 = vector.broadcast %17 : vector<1x32xf32> to vector<8x32xf32>
    %19 = vector.broadcast %cst : f32 to vector<8x32xf32>
    %20 = arith.select %16, %18, %19 : vector<8x32xi1>, vector<8x32xf32>
    %21 = arith.addf %9, %20 : vector<8x32xf32>
    %c1_i32_15 = arith.constant 1 : i32
    %22 = vector.broadcast %c1_i32_15 : i32 to vector<8x1xi32>
    %23 = arith.cmpi eq, %11, %22 : vector<8x1xi32>
    %c1 = arith.constant 1 : index
    %c0_16 = arith.constant 0 : index
    %24 = vector.load %arg5[%c1, %c0_16] : memref<2x32xf32, #tpu.memory_space<vmem>>, vector<1x32xf32>
    %cst_17 = arith.constant 0.000000e+00 : f32
    %25 = vector.shape_cast %23 : vector<8x1xi1> to vector<8x1xi1>
    %26 = vector.broadcast %25 : vector<8x1xi1> to vector<8x32xi1>
    %27 = vector.shape_cast %24 : vector<1x32xf32> to vector<1x32xf32>
    %28 = vector.broadcast %27 : vector<1x32xf32> to vector<8x32xf32>
    %29 = vector.broadcast %cst_17 : f32 to vector<8x32xf32>
    %30 = arith.select %26, %28, %29 : vector<8x32xi1>, vector<8x32xf32>
    %31 = arith.addf %21, %30 : vector<8x32xf32>
    %c0_18 = arith.constant 0 : index
    %c0_19 = arith.constant 0 : index
    %32 = vector.load %arg6[%c0_18, %c0_19] : memref<1x32xf32, #tpu.memory_space<vmem>>, vector<1x32xf32>
    %c0_20 = arith.constant 0 : index
    %c0_21 = arith.constant 0 : index
    %33 = vector.load %arg7[%c0_20, %c0_21] : memref<1x32xf32, #tpu.memory_space<vmem>>, vector<1x32xf32>
    %cst_22 = arith.constant dense<0.000000e+00> : vector<8xf32>
    %34 = vector.multi_reduction <add>, %31, %cst_22 [1] : vector<8x32xf32> to vector<8xf32>
    %35 = vector.shape_cast %34 : vector<8xf32> to vector<8x1xf32>
    %36 = arith.mulf %31, %31 : vector<8x32xf32>
    %cst_23 = arith.constant dense<0.000000e+00> : vector<8xf32>
    %37 = vector.multi_reduction <add>, %36, %cst_23 [1] : vector<8x32xf32> to vector<8xf32>
    %38 = vector.shape_cast %37 : vector<8xf32> to vector<8x1xf32>
    %cst_24 = arith.constant 3.200000e+01 : f32
    %39 = vector.broadcast %cst_24 : f32 to vector<8x1xf32>
    %40 = arith.divf %35, %39 : vector<8x1xf32>
    %cst_25 = arith.constant 3.200000e+01 : f32
    %41 = vector.broadcast %cst_25 : f32 to vector<8x1xf32>
    %42 = arith.divf %38, %41 : vector<8x1xf32>
    %43 = arith.mulf %40, %40 : vector<8x1xf32>
    %44 = arith.subf %42, %43 : vector<8x1xf32>
    %cst_26 = arith.constant 0.000000e+00 : f32
    %45 = vector.broadcast %cst_26 : f32 to vector<8x1xf32>
    %46 = arith.maximumf %44, %45 : vector<8x1xf32>
    %47 = vector.broadcast %40 : vector<8x1xf32> to vector<8x32xf32>
    %48 = arith.subf %31, %47 : vector<8x32xf32>
    %cst_27 = arith.constant 9.99999996E-13 : f32
    %49 = vector.broadcast %cst_27 : f32 to vector<8x1xf32>
    %50 = arith.addf %46, %49 : vector<8x1xf32>
    %51 = math.rsqrt %50 : vector<8x1xf32>
    %52 = vector.broadcast %51 : vector<8x1xf32> to vector<8x32xf32>
    %53 = arith.mulf %48, %52 : vector<8x32xf32>
    %54 = vector.broadcast %32 : vector<1x32xf32> to vector<8x32xf32>
    %55 = arith.mulf %53, %54 : vector<8x32xf32>
    %56 = vector.broadcast %33 : vector<1x32xf32> to vector<8x32xf32>
    %57 = arith.addf %55, %56 : vector<8x32xf32>
    %c0_28 = arith.constant 0 : index
    %c0_29 = arith.constant 0 : index
    %c0_30 = arith.constant 0 : index
    %58 = vector.load %arg9[%c0_28, %c0_29, %c0_30] : memref<1x8x32xf32, #tpu.memory_space<vmem>>, vector<1x8x32xf32>
    %59 = vector.shape_cast %58 : vector<1x8x32xf32> to vector<8x32xf32>
    %60 = vector.shape_cast %57 : vector<8x32xf32> to vector<1x8x32xf32>
    tpu.vector_store %arg9[%c0_28, %c0_29, %c0_30], %60 {strides = array<i32>} : memref<1x8x32xf32, #tpu.memory_space<vmem>>, vector<1x8x32xf32>,
    return
  }
  func.func @transform_0(%arg0: i32, %arg1: i32, %arg2: memref<16xi32, #tpu.memory_space<smem>>) -> (i32, i32, i32) {
    %c0_i32 = arith.constant 0 : i32
    %c0_i32_0 = arith.constant 0 : i32
    return %arg0, %arg1, %c0_i32 : i32, i32, i32
  }
  func.func @transform_1(%arg0: i32, %arg1: i32, %arg2: memref<16xi32, #tpu.memory_space<smem>>) -> (i32, i32) {
    %c0_i32 = arith.constant 0 : i32
    %c0_i32_0 = arith.constant 0 : i32
    return %arg1, %c0_i32 : i32, i32
  }
  func.func @transform_2(%arg0: i32, %arg1: i32, %arg2: memref<16xi32, #tpu.memory_space<smem>>) -> (i32, i32) {
    %c0_i32 = arith.constant 0 : i32
    %c0_i32_0 = arith.constant 0 : i32
    %c0_i32_1 = arith.constant 0 : i32
    return %c0_i32, %c0_i32_0 : i32, i32
  }
  func.func @transform_3(%arg0: i32, %arg1: i32, %arg2: memref<16xi32, #tpu.memory_space<smem>>) -> (i32, i32) {
    %c0_i32 = arith.constant 0 : i32
    %c0_i32_0 = arith.constant 0 : i32
    %c0_i32_1 = arith.constant 0 : i32
    return %c0_i32, %c0_i32_0 : i32, i32
  }
  func.func @transform_4(%arg0: i32, %arg1: i32, %arg2: memref<16xi32, #tpu.memory_space<smem>>) -> (i32, i32) {
    %c0_i32 = arith.constant 0 : i32
    %c0_i32_0 = arith.constant 0 : i32
    %c0_i32_1 = arith.constant 0 : i32
    return %c0_i32, %c0_i32_0 : i32, i32
  }
  func.func @transform_6(%arg0: i32, %arg1: i32, %arg2: memref<16xi32, #tpu.memory_space<smem>>) -> (i32, i32, i32) {
    %c0_i32 = arith.constant 0 : i32
    %c0_i32_0 = arith.constant 0 : i32
    return %arg0, %arg1, %c0_i32 : i32, i32, i32
  }
}

module attributes {stable_mosaic.version = 11 : i64} {
  func.func @_pooler_kernel(%arg0: i32, %arg1: memref<2x64xf32, #tpu.memory_space<vmem>>, %arg2: memref<64x64xbf16, #tpu.memory_space<vmem>>, %arg3: memref<1x64xf32, #tpu.memory_space<vmem>>, %arg4: memref<2x64xf32, #tpu.memory_space<vmem>>) attributes {dimension_semantics = [#tpu.dimension_semantics<arbitrary>], iteration_bounds = array<i64: 1>, scalar_prefetch = 0 : i64, scratch_operands = 0 : i64, tpu.core_type = #tpu.core_type<tc>, window_params = [{pipeline_mode = #tpu.pipeline_mode<synchronous>, transform_indices = @transform_0, window_bounds = array<i64: 2, 64>}, {pipeline_mode = #tpu.pipeline_mode<synchronous>, transform_indices = @transform_1, window_bounds = array<i64: 64, 64>}, {pipeline_mode = #tpu.pipeline_mode<synchronous>, transform_indices = @transform_2, window_bounds = array<i64: 1, 64>}, {pipeline_mode = #tpu.pipeline_mode<synchronous>, transform_indices = @transform_3, window_bounds = array<i64: 2, 64>}]} {
    %c0 = arith.constant 0 : index
    %c0_0 = arith.constant 0 : index
    %0 = vector.load %arg1[%c0, %c0_0] : memref<2x64xf32, #tpu.memory_space<vmem>>, vector<2x64xf32>
    %1 = arith.truncf %0 : vector<2x64xf32> to vector<2x64xbf16>
    %c0_1 = arith.constant 0 : index
    %c0_2 = arith.constant 0 : index
    %2 = vector.load %arg2[%c0_1, %c0_2] : memref<64x64xbf16, #tpu.memory_space<vmem>>, vector<64x64xbf16>
    %cst = arith.constant dense<0.000000e+00> : vector<2x64xf32>
    %3 = tpu.matmul %1, %2, %cst {dimension_numbers = #tpu.dot_dimension_numbers<[1], [0], [0], [1], [0, 0, 1, 1], [], []>} : vector<2x64xbf16>, vector<64x64xbf16>, vector<2x64xf32> -> vector<2x64xf32>
    %c0_3 = arith.constant 0 : index
    %c0_4 = arith.constant 0 : index
    %4 = vector.load %arg3[%c0_3, %c0_4] : memref<1x64xf32, #tpu.memory_space<vmem>>, vector<1x64xf32>
    %5 = vector.broadcast %4 : vector<1x64xf32> to vector<2x64xf32>
    %6 = arith.addf %3, %5 : vector<2x64xf32>
    %7 = math.tanh %6 : vector<2x64xf32>
    %c0_5 = arith.constant 0 : index
    %c0_6 = arith.constant 0 : index
    %8 = vector.load %arg4[%c0_5, %c0_6] : memref<2x64xf32, #tpu.memory_space<vmem>>, vector<2x64xf32>
    tpu.vector_store %arg4[%c0_5, %c0_6], %7 {strides = array<i32>} : memref<2x64xf32, #tpu.memory_space<vmem>>, vector<2x64xf32>,
    return
  }
  func.func @transform_0(%arg0: i32) -> (i32, i32) {
    %c0_i32 = arith.constant 0 : i32
    %c0_i32_0 = arith.constant 0 : i32
    %c0_i32_1 = arith.constant 0 : i32
    return %c0_i32, %c0_i32_0 : i32, i32
  }
  func.func @transform_1(%arg0: i32) -> (i32, i32) {
    %c0_i32 = arith.constant 0 : i32
    %c0_i32_0 = arith.constant 0 : i32
    %c0_i32_1 = arith.constant 0 : i32
    return %c0_i32, %c0_i32_0 : i32, i32
  }
  func.func @transform_2(%arg0: i32) -> (i32, i32) {
    %c0_i32 = arith.constant 0 : i32
    %c0_i32_0 = arith.constant 0 : i32
    %c0_i32_1 = arith.constant 0 : i32
    return %c0_i32, %c0_i32_0 : i32, i32
  }
  func.func @transform_3(%arg0: i32) -> (i32, i32) {
    %c0_i32 = arith.constant 0 : i32
    %c0_i32_0 = arith.constant 0 : i32
    %c0_i32_1 = arith.constant 0 : i32
    return %c0_i32, %c0_i32_0 : i32, i32
  }
}

module attributes {stable_mosaic.version = 11 : i64} {
  func.func @_albert_layers_kernel(%arg0: i32, %arg1: i32, %arg2: memref<1x8x64xf32, #tpu.memory_space<vmem>>, %arg3: memref<1x1x8xf32, #tpu.memory_space<vmem>>, %arg4: memref<64x192xbf16, #tpu.memory_space<vmem>>, %arg5: memref<1x192xf32, #tpu.memory_space<vmem>>, %arg6: memref<64x64xbf16, #tpu.memory_space<vmem>>, %arg7: memref<1x64xf32, #tpu.memory_space<vmem>>, %arg8: memref<1x64xf32, #tpu.memory_space<vmem>>, %arg9: memref<1x64xf32, #tpu.memory_space<vmem>>, %arg10: memref<64x128xbf16, #tpu.memory_space<vmem>>, %arg11: memref<1x128xf32, #tpu.memory_space<vmem>>, %arg12: memref<128x64xbf16, #tpu.memory_space<vmem>>, %arg13: memref<1x64xf32, #tpu.memory_space<vmem>>, %arg14: memref<1x64xf32, #tpu.memory_space<vmem>>, %arg15: memref<1x64xf32, #tpu.memory_space<vmem>>, %arg16: memref<1x8x64xf32, #tpu.memory_space<vmem>>, %arg17: memref<8x64xf32, #tpu.memory_space<vmem>>) attributes {dimension_semantics = [#tpu.dimension_semantics<parallel>, #tpu.dimension_semantics<arbitrary>], iteration_bounds = array<i64: 2, 2>, scalar_prefetch = 0 : i64, scratch_operands = 1 : i64, tpu.core_type = #tpu.core_type<tc>, window_params = [{transform_indices = @transform_0, window_bounds = array<i64: 1, 8, 64>}, {transform_indices = @transform_1, window_bounds = array<i64: 1, 1, 8>}, {pipeline_mode = #tpu.pipeline_mode<synchronous>, transform_indices = @transform_2, window_bounds = array<i64: 64, 192>}, {pipeline_mode = #tpu.pipeline_mode<synchronous>, transform_indices = @transform_3, window_bounds = array<i64: 1, 192>}, {pipeline_mode = #tpu.pipeline_mode<synchronous>, transform_indices = @transform_4, window_bounds = array<i64: 64, 64>}, {pipeline_mode = #tpu.pipeline_mode<synchronous>, transform_indices = @transform_5, window_bounds = array<i64: 1, 64>}, {pipeline_mode = #tpu.pipeline_mode<synchronous>, transform_indices = @transform_6, window_bounds = array<i64: 1, 64>}, {pipeline_mode = #tpu.pipeline_mode<synchronous>, transform_indices = @transform_7, window_bounds = array<i64: 1, 64>}, {pipeline_mode = #tpu.pipeline_mode<synchronous>, transform_indices = @transform_8, window_bounds = array<i64: 64, 128>}, {pipeline_mode = #tpu.pipeline_mode<synchronous>, transform_indices = @transform_9, window_bounds = array<i64: 1, 128>}, {pipeline_mode = #tpu.pipeline_mode<synchronous>, transform_indices = @transform_10, window_bounds = array<i64: 128, 64>}, {pipeline_mode = #tpu.pipeline_mode<synchronous>, transform_indices = @transform_11, window_bounds = array<i64: 1, 64>}, {pipeline_mode = #tpu.pipeline_mode<synchronous>, transform_indices = @transform_12, window_bounds = array<i64: 1, 64>}, {pipeline_mode = #tpu.pipeline_mode<synchronous>, transform_indices = @transform_13, window_bounds = array<i64: 1, 64>}, {transform_indices = @transform_14, window_bounds = array<i64: 1, 8, 64>}]} {
    %c0_i32 = arith.constant 0 : i32
    %0 = arith.cmpi eq, %arg1, %c0_i32 : i32
    %1 = arith.extui %0 : i1 to i32
    %c0_i32_0 = arith.constant 0 : i32
    %2 = arith.cmpi ne, %1, %c0_i32_0 : i32
    scf.if %2 {
      %c0_73 = arith.constant 0 : index
      %c0_74 = arith.constant 0 : index
      %c0_75 = arith.constant 0 : index
      %197 = vector.load %arg2[%c0_73, %c0_74, %c0_75] : memref<1x8x64xf32, #tpu.memory_space<vmem>>, vector<1x8x64xf32>
      %198 = vector.shape_cast %197 : vector<1x8x64xf32> to vector<8x64xf32>
      %c0_76 = arith.constant 0 : index
      %c0_77 = arith.constant 0 : index
      %199 = vector.load %arg17[%c0_76, %c0_77] : memref<8x64xf32, #tpu.memory_space<vmem>>, vector<8x64xf32>
      tpu.vector_store %arg17[%c0_76, %c0_77], %198 {strides = array<i32>} : memref<8x64xf32, #tpu.memory_space<vmem>>, vector<8x64xf32>,
    } else {
    }
    %c0 = arith.constant 0 : index
    %c0_1 = arith.constant 0 : index
    %3 = vector.load %arg17[%c0, %c0_1] : memref<8x64xf32, #tpu.memory_space<vmem>>, vector<8x64xf32>
    %c0_2 = arith.constant 0 : index
    %c0_3 = arith.constant 0 : index
    %c0_4 = arith.constant 0 : index
    %4 = vector.load %arg3[%c0_2, %c0_3, %c0_4] : memref<1x1x8xf32, #tpu.memory_space<vmem>>, vector<1x1x8xf32>
    %5 = vector.shape_cast %4 : vector<1x1x8xf32> to vector<1x8xf32>
    %6 = arith.truncf %3 : vector<8x64xf32> to vector<8x64xbf16>
    %c0_5 = arith.constant 0 : index
    %c0_6 = arith.constant 0 : index
    %7 = vector.load %arg4[%c0_5, %c0_6] : memref<64x192xbf16, #tpu.memory_space<vmem>>, vector<64x192xbf16>
    %cst = arith.constant dense<0.000000e+00> : vector<8x192xf32>
    %8 = tpu.matmul %6, %7, %cst {dimension_numbers = #tpu.dot_dimension_numbers<[1], [0], [0], [1], [0, 0, 1, 1], [], []>} : vector<8x64xbf16>, vector<64x192xbf16>, vector<8x192xf32> -> vector<8x192xf32>
    %c0_7 = arith.constant 0 : index
    %c0_8 = arith.constant 0 : index
    %9 = vector.load %arg5[%c0_7, %c0_8] : memref<1x192xf32, #tpu.memory_space<vmem>>, vector<1x192xf32>
    %10 = vector.broadcast %9 : vector<1x192xf32> to vector<8x192xf32>
    %11 = arith.addf %8, %10 : vector<8x192xf32>
    %12 = vector.extract_strided_slice %11 {offsets = [0, 0], sizes = [8, 64], strides = [1, 1]} : vector<8x192xf32> to vector<8x64xf32>
    %13 = vector.extract_strided_slice %11 {offsets = [0, 64], sizes = [8, 64], strides = [1, 1]} : vector<8x192xf32> to vector<8x64xf32>
    %14 = vector.extract_strided_slice %11 {offsets = [0, 128], sizes = [8, 64], strides = [1, 1]} : vector<8x192xf32> to vector<8x64xf32>
    %15 = vector.extract_strided_slice %12 {offsets = [0, 0], sizes = [8, 16], strides = [1, 1]} : vector<8x64xf32> to vector<8x16xf32>
    %16 = arith.truncf %15 : vector<8x16xf32> to vector<8x16xbf16>
    %17 = vector.extract_strided_slice %13 {offsets = [0, 0], sizes = [8, 16], strides = [1, 1]} : vector<8x64xf32> to vector<8x16xf32>
    %18 = arith.truncf %17 : vector<8x16xf32> to vector<8x16xbf16>
    %19 = vector.extract_strided_slice %14 {offsets = [0, 0], sizes = [8, 16], strides = [1, 1]} : vector<8x64xf32> to vector<8x16xf32>
    %20 = arith.truncf %19 : vector<8x16xf32> to vector<8x16xbf16>
    %cst_9 = arith.constant dense<0.000000e+00> : vector<8x8xf32>
    %21 = tpu.matmul %16, %18, %cst_9 {dimension_numbers = #tpu.dot_dimension_numbers<[1], [1], [0], [0], [0, 0, 1, 0], [], []>} : vector<8x16xbf16>, vector<8x16xbf16>, vector<8x8xf32> -> vector<8x8xf32>
    %cst_10 = arith.constant 2.500000e-01 : f32
    %22 = vector.broadcast %cst_10 : f32 to vector<8x8xf32>
    %23 = arith.mulf %21, %22 : vector<8x8xf32>
    %24 = vector.broadcast %5 : vector<1x8xf32> to vector<8x8xf32>
    %25 = arith.addf %23, %24 : vector<8x8xf32>
    %cst_11 = arith.constant dense<0xFF800000> : vector<8xf32>
    %26 = vector.multi_reduction <maximumf>, %25, %cst_11 [1] : vector<8x8xf32> to vector<8xf32>
    %27 = vector.shape_cast %26 : vector<8xf32> to vector<8x1xf32>
    %28 = vector.broadcast %27 : vector<8x1xf32> to vector<8x8xf32>
    %29 = arith.subf %25, %28 : vector<8x8xf32>
    %30 = math.exp %29 : vector<8x8xf32>
    %cst_12 = arith.constant dense<0.000000e+00> : vector<8xf32>
    %31 = vector.multi_reduction <add>, %30, %cst_12 [1] : vector<8x8xf32> to vector<8xf32>
    %32 = vector.shape_cast %31 : vector<8xf32> to vector<8x1xf32>
    %33 = tpu.reciprocal %32 {approx = true} : vector<8x1xf32> -> vector<8x1xf32>
    %34 = vector.broadcast %33 : vector<8x1xf32> to vector<8x8xf32>
    %35 = arith.mulf %30, %34 : vector<8x8xf32>
    %36 = arith.truncf %35 : vector<8x8xf32> to vector<8x8xbf16>
    %cst_13 = arith.constant dense<0.000000e+00> : vector<8x16xf32>
    %37 = tpu.matmul %36, %20, %cst_13 {dimension_numbers = #tpu.dot_dimension_numbers<[1], [0], [0], [1], [0, 0, 1, 1], [], []>} : vector<8x8xbf16>, vector<8x16xbf16>, vector<8x16xf32> -> vector<8x16xf32>
    %38 = vector.extract_strided_slice %12 {offsets = [0, 16], sizes = [8, 16], strides = [1, 1]} : vector<8x64xf32> to vector<8x16xf32>
    %39 = arith.truncf %38 : vector<8x16xf32> to vector<8x16xbf16>
    %40 = vector.extract_strided_slice %13 {offsets = [0, 16], sizes = [8, 16], strides = [1, 1]} : vector<8x64xf32> to vector<8x16xf32>
    %41 = arith.truncf %40 : vector<8x16xf32> to vector<8x16xbf16>
    %42 = vector.extract_strided_slice %14 {offsets = [0, 16], sizes = [8, 16], strides = [1, 1]} : vector<8x64xf32> to vector<8x16xf32>
    %43 = arith.truncf %42 : vector<8x16xf32> to vector<8x16xbf16>
    %cst_14 = arith.constant dense<0.000000e+00> : vector<8x8xf32>
    %44 = tpu.matmul %39, %41, %cst_14 {dimension_numbers = #tpu.dot_dimension_numbers<[1], [1], [0], [0], [0, 0, 1, 0], [], []>} : vector<8x16xbf16>, vector<8x16xbf16>, vector<8x8xf32> -> vector<8x8xf32>
    %cst_15 = arith.constant 2.500000e-01 : f32
    %45 = vector.broadcast %cst_15 : f32 to vector<8x8xf32>
    %46 = arith.mulf %44, %45 : vector<8x8xf32>
    %47 = vector.broadcast %5 : vector<1x8xf32> to vector<8x8xf32>
    %48 = arith.addf %46, %47 : vector<8x8xf32>
    %cst_16 = arith.constant dense<0xFF800000> : vector<8xf32>
    %49 = vector.multi_reduction <maximumf>, %48, %cst_16 [1] : vector<8x8xf32> to vector<8xf32>
    %50 = vector.shape_cast %49 : vector<8xf32> to vector<8x1xf32>
    %51 = vector.broadcast %50 : vector<8x1xf32> to vector<8x8xf32>
    %52 = arith.subf %48, %51 : vector<8x8xf32>
    %53 = math.exp %52 : vector<8x8xf32>
    %cst_17 = arith.constant dense<0.000000e+00> : vector<8xf32>
    %54 = vector.multi_reduction <add>, %53, %cst_17 [1] : vector<8x8xf32> to vector<8xf32>
    %55 = vector.shape_cast %54 : vector<8xf32> to vector<8x1xf32>
    %56 = tpu.reciprocal %55 {approx = true} : vector<8x1xf32> -> vector<8x1xf32>
    %57 = vector.broadcast %56 : vector<8x1xf32> to vector<8x8xf32>
    %58 = arith.mulf %53, %57 : vector<8x8xf32>
    %59 = arith.truncf %58 : vector<8x8xf32> to vector<8x8xbf16>
    %cst_18 = arith.constant dense<0.000000e+00> : vector<8x16xf32>
    %60 = tpu.matmul %59, %43, %cst_18 {dimension_numbers = #tpu.dot_dimension_numbers<[1], [0], [0], [1], [0, 0, 1, 1], [], []>} : vector<8x8xbf16>, vector<8x16xbf16>, vector<8x16xf32> -> vector<8x16xf32>
    %61 = vector.extract_strided_slice %12 {offsets = [0, 32], sizes = [8, 16], strides = [1, 1]} : vector<8x64xf32> to vector<8x16xf32>
    %62 = arith.truncf %61 : vector<8x16xf32> to vector<8x16xbf16>
    %63 = vector.extract_strided_slice %13 {offsets = [0, 32], sizes = [8, 16], strides = [1, 1]} : vector<8x64xf32> to vector<8x16xf32>
    %64 = arith.truncf %63 : vector<8x16xf32> to vector<8x16xbf16>
    %65 = vector.extract_strided_slice %14 {offsets = [0, 32], sizes = [8, 16], strides = [1, 1]} : vector<8x64xf32> to vector<8x16xf32>
    %66 = arith.truncf %65 : vector<8x16xf32> to vector<8x16xbf16>
    %cst_19 = arith.constant dense<0.000000e+00> : vector<8x8xf32>
    %67 = tpu.matmul %62, %64, %cst_19 {dimension_numbers = #tpu.dot_dimension_numbers<[1], [1], [0], [0], [0, 0, 1, 0], [], []>} : vector<8x16xbf16>, vector<8x16xbf16>, vector<8x8xf32> -> vector<8x8xf32>
    %cst_20 = arith.constant 2.500000e-01 : f32
    %68 = vector.broadcast %cst_20 : f32 to vector<8x8xf32>
    %69 = arith.mulf %67, %68 : vector<8x8xf32>
    %70 = vector.broadcast %5 : vector<1x8xf32> to vector<8x8xf32>
    %71 = arith.addf %69, %70 : vector<8x8xf32>
    %cst_21 = arith.constant dense<0xFF800000> : vector<8xf32>
    %72 = vector.multi_reduction <maximumf>, %71, %cst_21 [1] : vector<8x8xf32> to vector<8xf32>
    %73 = vector.shape_cast %72 : vector<8xf32> to vector<8x1xf32>
    %74 = vector.broadcast %73 : vector<8x1xf32> to vector<8x8xf32>
    %75 = arith.subf %71, %74 : vector<8x8xf32>
    %76 = math.exp %75 : vector<8x8xf32>
    %cst_22 = arith.constant dense<0.000000e+00> : vector<8xf32>
    %77 = vector.multi_reduction <add>, %76, %cst_22 [1] : vector<8x8xf32> to vector<8xf32>
    %78 = vector.shape_cast %77 : vector<8xf32> to vector<8x1xf32>
    %79 = tpu.reciprocal %78 {approx = true} : vector<8x1xf32> -> vector<8x1xf32>
    %80 = vector.broadcast %79 : vector<8x1xf32> to vector<8x8xf32>
    %81 = arith.mulf %76, %80 : vector<8x8xf32>
    %82 = arith.truncf %81 : vector<8x8xf32> to vector<8x8xbf16>
    %cst_23 = arith.constant dense<0.000000e+00> : vector<8x16xf32>
    %83 = tpu.matmul %82, %66, %cst_23 {dimension_numbers = #tpu.dot_dimension_numbers<[1], [0], [0], [1], [0, 0, 1, 1], [], []>} : vector<8x8xbf16>, vector<8x16xbf16>, vector<8x16xf32> -> vector<8x16xf32>
    %84 = vector.extract_strided_slice %12 {offsets = [0, 48], sizes = [8, 16], strides = [1, 1]} : vector<8x64xf32> to vector<8x16xf32>
    %85 = arith.truncf %84 : vector<8x16xf32> to vector<8x16xbf16>
    %86 = vector.extract_strided_slice %13 {offsets = [0, 48], sizes = [8, 16], strides = [1, 1]} : vector<8x64xf32> to vector<8x16xf32>
    %87 = arith.truncf %86 : vector<8x16xf32> to vector<8x16xbf16>
    %88 = vector.extract_strided_slice %14 {offsets = [0, 48], sizes = [8, 16], strides = [1, 1]} : vector<8x64xf32> to vector<8x16xf32>
    %89 = arith.truncf %88 : vector<8x16xf32> to vector<8x16xbf16>
    %cst_24 = arith.constant dense<0.000000e+00> : vector<8x8xf32>
    %90 = tpu.matmul %85, %87, %cst_24 {dimension_numbers = #tpu.dot_dimension_numbers<[1], [1], [0], [0], [0, 0, 1, 0], [], []>} : vector<8x16xbf16>, vector<8x16xbf16>, vector<8x8xf32> -> vector<8x8xf32>
    %cst_25 = arith.constant 2.500000e-01 : f32
    %91 = vector.broadcast %cst_25 : f32 to vector<8x8xf32>
    %92 = arith.mulf %90, %91 : vector<8x8xf32>
    %93 = vector.broadcast %5 : vector<1x8xf32> to vector<8x8xf32>
    %94 = arith.addf %92, %93 : vector<8x8xf32>
    %cst_26 = arith.constant dense<0xFF800000> : vector<8xf32>
    %95 = vector.multi_reduction <maximumf>, %94, %cst_26 [1] : vector<8x8xf32> to vector<8xf32>
    %96 = vector.shape_cast %95 : vector<8xf32> to vector<8x1xf32>
    %97 = vector.broadcast %96 : vector<8x1xf32> to vector<8x8xf32>
    %98 = arith.subf %94, %97 : vector<8x8xf32>
    %99 = math.exp %98 : vector<8x8xf32>
    %cst_27 = arith.constant dense<0.000000e+00> : vector<8xf32>
    %100 = vector.multi_reduction <add>, %99, %cst_27 [1] : vector<8x8xf32> to vector<8xf32>
    %101 = vector.shape_cast %100 : vector<8xf32> to vector<8x1xf32>
    %102 = tpu.reciprocal %101 {approx = true} : vector<8x1xf32> -> vector<8x1xf32>
    %103 = vector.broadcast %102 : vector<8x1xf32> to vector<8x8xf32>
    %104 = arith.mulf %99, %103 : vector<8x8xf32>
    %105 = arith.truncf %104 : vector<8x8xf32> to vector<8x8xbf16>
    %cst_28 = arith.constant dense<0.000000e+00> : vector<8x16xf32>
    %106 = tpu.matmul %105, %89, %cst_28 {dimension_numbers = #tpu.dot_dimension_numbers<[1], [0], [0], [1], [0, 0, 1, 1], [], []>} : vector<8x8xbf16>, vector<8x16xbf16>, vector<8x16xf32> -> vector<8x16xf32>
    %107 = tpu.concatenate %37, %60, %83, %106 in 1 : vector<8x16xf32>, vector<8x16xf32>, vector<8x16xf32>, vector<8x16xf32> -> vector<8x64xf32>
    %108 = arith.truncf %107 : vector<8x64xf32> to vector<8x64xbf16>
    %c0_29 = arith.constant 0 : index
    %c0_30 = arith.constant 0 : index
    %109 = vector.load %arg6[%c0_29, %c0_30] : memref<64x64xbf16, #tpu.memory_space<vmem>>, vector<64x64xbf16>
    %cst_31 = arith.constant dense<0.000000e+00> : vector<8x64xf32>
    %110 = tpu.matmul %108, %109, %cst_31 {dimension_numbers = #tpu.dot_dimension_numbers<[1], [0], [0], [1], [0, 0, 1, 1], [], []>} : vector<8x64xbf16>, vector<64x64xbf16>, vector<8x64xf32> -> vector<8x64xf32>
    %c0_32 = arith.constant 0 : index
    %c0_33 = arith.constant 0 : index
    %111 = vector.load %arg7[%c0_32, %c0_33] : memref<1x64xf32, #tpu.memory_space<vmem>>, vector<1x64xf32>
    %112 = vector.broadcast %111 : vector<1x64xf32> to vector<8x64xf32>
    %113 = arith.addf %110, %112 : vector<8x64xf32>
    %114 = arith.addf %113, %3 : vector<8x64xf32>
    %c0_34 = arith.constant 0 : index
    %c0_35 = arith.constant 0 : index
    %115 = vector.load %arg8[%c0_34, %c0_35] : memref<1x64xf32, #tpu.memory_space<vmem>>, vector<1x64xf32>
    %c0_36 = arith.constant 0 : index
    %c0_37 = arith.constant 0 : index
    %116 = vector.load %arg9[%c0_36, %c0_37] : memref<1x64xf32, #tpu.memory_space<vmem>>, vector<1x64xf32>
    %cst_38 = arith.constant dense<0.000000e+00> : vector<8xf32>
    %117 = vector.multi_reduction <add>, %114, %cst_38 [1] : vector<8x64xf32> to vector<8xf32>
    %118 = vector.shape_cast %117 : vector<8xf32> to vector<8x1xf32>
    %119 = arith.mulf %114, %114 : vector<8x64xf32>
    %cst_39 = arith.constant dense<0.000000e+00> : vector<8xf32>
    %120 = vector.multi_reduction <add>, %119, %cst_39 [1] : vector<8x64xf32> to vector<8xf32>
    %121 = vector.shape_cast %120 : vector<8xf32> to vector<8x1xf32>
    %cst_40 = arith.constant 6.400000e+01 : f32
    %122 = vector.broadcast %cst_40 : f32 to vector<8x1xf32>
    %123 = arith.divf %118, %122 : vector<8x1xf32>
    %cst_41 = arith.constant 6.400000e+01 : f32
    %124 = vector.broadcast %cst_41 : f32 to vector<8x1xf32>
    %125 = arith.divf %121, %124 : vector<8x1xf32>
    %126 = arith.mulf %123, %123 : vector<8x1xf32>
    %127 = arith.subf %125, %126 : vector<8x1xf32>
    %cst_42 = arith.constant 0.000000e+00 : f32
    %128 = vector.broadcast %cst_42 : f32 to vector<8x1xf32>
    %129 = arith.maximumf %127, %128 : vector<8x1xf32>
    %130 = vector.broadcast %123 : vector<8x1xf32> to vector<8x64xf32>
    %131 = arith.subf %114, %130 : vector<8x64xf32>
    %cst_43 = arith.constant 9.99999996E-13 : f32
    %132 = vector.broadcast %cst_43 : f32 to vector<8x1xf32>
    %133 = arith.addf %129, %132 : vector<8x1xf32>
    %134 = math.rsqrt %133 : vector<8x1xf32>
    %135 = vector.broadcast %134 : vector<8x1xf32> to vector<8x64xf32>
    %136 = arith.mulf %131, %135 : vector<8x64xf32>
    %137 = vector.broadcast %115 : vector<1x64xf32> to vector<8x64xf32>
    %138 = arith.mulf %136, %137 : vector<8x64xf32>
    %139 = vector.broadcast %116 : vector<1x64xf32> to vector<8x64xf32>
    %140 = arith.addf %138, %139 : vector<8x64xf32>
    %141 = arith.truncf %140 : vector<8x64xf32> to vector<8x64xbf16>
    %c0_44 = arith.constant 0 : index
    %c0_45 = arith.constant 0 : index
    %142 = vector.load %arg10[%c0_44, %c0_45] : memref<64x128xbf16, #tpu.memory_space<vmem>>, vector<64x128xbf16>
    %cst_46 = arith.constant dense<0.000000e+00> : vector<8x128xf32>
    %143 = tpu.matmul %141, %142, %cst_46 {dimension_numbers = #tpu.dot_dimension_numbers<[1], [0], [0], [1], [0, 0, 1, 1], [], []>} : vector<8x64xbf16>, vector<64x128xbf16>, vector<8x128xf32> -> vector<8x128xf32>
    %c0_47 = arith.constant 0 : index
    %c0_48 = arith.constant 0 : index
    %144 = vector.load %arg11[%c0_47, %c0_48] : memref<1x128xf32, #tpu.memory_space<vmem>>, vector<1x128xf32>
    %145 = vector.broadcast %144 : vector<1x128xf32> to vector<8x128xf32>
    %146 = arith.addf %143, %145 : vector<8x128xf32>
    %cst_49 = arith.constant 5.000000e-01 : f32
    %147 = vector.broadcast %cst_49 : f32 to vector<8x128xf32>
    %148 = arith.mulf %147, %146 : vector<8x128xf32>
    %cst_50 = arith.constant 4.471500e-02 : f32
    %149 = vector.broadcast %cst_50 : f32 to vector<8x128xf32>
    %150 = arith.mulf %149, %146 : vector<8x128xf32>
    %151 = arith.mulf %150, %146 : vector<8x128xf32>
    %152 = arith.mulf %151, %146 : vector<8x128xf32>
    %153 = arith.addf %146, %152 : vector<8x128xf32>
    %cst_51 = arith.constant 0.797884583 : f32
    %154 = vector.broadcast %cst_51 : f32 to vector<8x128xf32>
    %155 = arith.mulf %154, %153 : vector<8x128xf32>
    %156 = math.tanh %155 : vector<8x128xf32>
    %cst_52 = arith.constant 1.000000e+00 : f32
    %157 = vector.broadcast %cst_52 : f32 to vector<8x128xf32>
    %158 = arith.addf %157, %156 : vector<8x128xf32>
    %159 = arith.mulf %148, %158 : vector<8x128xf32>
    %160 = arith.truncf %159 : vector<8x128xf32> to vector<8x128xbf16>
    %c0_53 = arith.constant 0 : index
    %c0_54 = arith.constant 0 : index
    %161 = vector.load %arg12[%c0_53, %c0_54] : memref<128x64xbf16, #tpu.memory_space<vmem>>, vector<128x64xbf16>
    %cst_55 = arith.constant dense<0.000000e+00> : vector<8x64xf32>
    %162 = tpu.matmul %160, %161, %cst_55 {dimension_numbers = #tpu.dot_dimension_numbers<[1], [0], [0], [1], [0, 0, 1, 1], [], []>} : vector<8x128xbf16>, vector<128x64xbf16>, vector<8x64xf32> -> vector<8x64xf32>
    %c0_56 = arith.constant 0 : index
    %c0_57 = arith.constant 0 : index
    %163 = vector.load %arg13[%c0_56, %c0_57] : memref<1x64xf32, #tpu.memory_space<vmem>>, vector<1x64xf32>
    %164 = vector.broadcast %163 : vector<1x64xf32> to vector<8x64xf32>
    %165 = arith.addf %162, %164 : vector<8x64xf32>
    %166 = arith.addf %165, %140 : vector<8x64xf32>
    %c0_58 = arith.constant 0 : index
    %c0_59 = arith.constant 0 : index
    %167 = vector.load %arg14[%c0_58, %c0_59] : memref<1x64xf32, #tpu.memory_space<vmem>>, vector<1x64xf32>
    %c0_60 = arith.constant 0 : index
    %c0_61 = arith.constant 0 : index
    %168 = vector.load %arg15[%c0_60, %c0_61] : memref<1x64xf32, #tpu.memory_space<vmem>>, vector<1x64xf32>
    %cst_62 = arith.constant dense<0.000000e+00> : vector<8xf32>
    %169 = vector.multi_reduction <add>, %166, %cst_62 [1] : vector<8x64xf32> to vector<8xf32>
    %170 = vector.shape_cast %169 : vector<8xf32> to vector<8x1xf32>
    %171 = arith.mulf %166, %166 : vector<8x64xf32>
    %cst_63 = arith.constant dense<0.000000e+00> : vector<8xf32>
    %172 = vector.multi_reduction <add>, %171, %cst_63 [1] : vector<8x64xf32> to vector<8xf32>
    %173 = vector.shape_cast %172 : vector<8xf32> to vector<8x1xf32>
    %cst_64 = arith.constant 6.400000e+01 : f32
    %174 = vector.broadcast %cst_64 : f32 to vector<8x1xf32>
    %175 = arith.divf %170, %174 : vector<8x1xf32>
    %cst_65 = arith.constant 6.400000e+01 : f32
    %176 = vector.broadcast %cst_65 : f32 to vector<8x1xf32>
    %177 = arith.divf %173, %176 : vector<8x1xf32>
    %178 = arith.mulf %175, %175 : vector<8x1xf32>
    %179 = arith.subf %177, %178 : vector<8x1xf32>
    %cst_66 = arith.constant 0.000000e+00 : f32
    %180 = vector.broadcast %cst_66 : f32 to vector<8x1xf32>
    %181 = arith.maximumf %179, %180 : vector<8x1xf32>
    %182 = vector.broadcast %175 : vector<8x1xf32> to vector<8x64xf32>
    %183 = arith.subf %166, %182 : vector<8x64xf32>
    %cst_67 = arith.constant 9.99999996E-13 : f32
    %184 = vector.broadcast %cst_67 : f32 to vector<8x1xf32>
    %185 = arith.addf %181, %184 : vector<8x1xf32>
    %186 = math.rsqrt %185 : vector<8x1xf32>
    %187 = vector.broadcast %186 : vector<8x1xf32> to vector<8x64xf32>
    %188 = arith.mulf %183, %187 : vector<8x64xf32>
    %189 = vector.broadcast %167 : vector<1x64xf32> to vector<8x64xf32>
    %190 = arith.mulf %188, %189 : vector<8x64xf32>
    %191 = vector.broadcast %168 : vector<1x64xf32> to vector<8x64xf32>
    %192 = arith.addf %190, %191 : vector<8x64xf32>
    %c0_68 = arith.constant 0 : index
    %c0_69 = arith.constant 0 : index
    %193 = vector.load %arg17[%c0_68, %c0_69] : memref<8x64xf32, #tpu.memory_space<vmem>>, vector<8x64xf32>
    tpu.vector_store %arg17[%c0_68, %c0_69], %192 {strides = array<i32>} : memref<8x64xf32, #tpu.memory_space<vmem>>, vector<8x64xf32>,
    %c0_70 = arith.constant 0 : index
    %c0_71 = arith.constant 0 : index
    %c0_72 = arith.constant 0 : index
    %194 = vector.load %arg16[%c0_70, %c0_71, %c0_72] : memref<1x8x64xf32, #tpu.memory_space<vmem>>, vector<1x8x64xf32>
    %195 = vector.shape_cast %194 : vector<1x8x64xf32> to vector<8x64xf32>
    %196 = vector.shape_cast %192 : vector<8x64xf32> to vector<1x8x64xf32>
    tpu.vector_store %arg16[%c0_70, %c0_71, %c0_72], %196 {strides = array<i32>} : memref<1x8x64xf32, #tpu.memory_space<vmem>>, vector<1x8x64xf32>,
    return
  }
  func.func @transform_0(%arg0: i32, %arg1: i32) -> (i32, i32, i32) {
    %c0_i32 = arith.constant 0 : i32
    %c0_i32_0 = arith.constant 0 : i32
    %c0_i32_1 = arith.constant 0 : i32
    return %arg0, %c0_i32, %c0_i32_0 : i32, i32, i32
  }
  func.func @transform_1(%arg0: i32, %arg1: i32) -> (i32, i32, i32) {
    %c0_i32 = arith.constant 0 : i32
    %c0_i32_0 = arith.constant 0 : i32
    %c0_i32_1 = arith.constant 0 : i32
    return %arg0, %c0_i32, %c0_i32_0 : i32, i32, i32
  }
  func.func @transform_2(%arg0: i32, %arg1: i32) -> (i32, i32) {
    %c0_i32 = arith.constant 0 : i32
    %c0_i32_0 = arith.constant 0 : i32
    %c0_i32_1 = arith.constant 0 : i32
    return %c0_i32, %c0_i32_0 : i32, i32
  }
  func.func @transform_3(%arg0: i32, %arg1: i32) -> (i32, i32) {
    %c0_i32 = arith.constant 0 : i32
    %c0_i32_0 = arith.constant 0 : i32
    %c0_i32_1 = arith.constant 0 : i32
    return %c0_i32, %c0_i32_0 : i32, i32
  }
  func.func @transform_4(%arg0: i32, %arg1: i32) -> (i32, i32) {
    %c0_i32 = arith.constant 0 : i32
    %c0_i32_0 = arith.constant 0 : i32
    %c0_i32_1 = arith.constant 0 : i32
    return %c0_i32, %c0_i32_0 : i32, i32
  }
  func.func @transform_5(%arg0: i32, %arg1: i32) -> (i32, i32) {
    %c0_i32 = arith.constant 0 : i32
    %c0_i32_0 = arith.constant 0 : i32
    %c0_i32_1 = arith.constant 0 : i32
    return %c0_i32, %c0_i32_0 : i32, i32
  }
  func.func @transform_6(%arg0: i32, %arg1: i32) -> (i32, i32) {
    %c0_i32 = arith.constant 0 : i32
    %c0_i32_0 = arith.constant 0 : i32
    %c0_i32_1 = arith.constant 0 : i32
    return %c0_i32, %c0_i32_0 : i32, i32
  }
  func.func @transform_7(%arg0: i32, %arg1: i32) -> (i32, i32) {
    %c0_i32 = arith.constant 0 : i32
    %c0_i32_0 = arith.constant 0 : i32
    %c0_i32_1 = arith.constant 0 : i32
    return %c0_i32, %c0_i32_0 : i32, i32
  }
  func.func @transform_8(%arg0: i32, %arg1: i32) -> (i32, i32) {
    %c0_i32 = arith.constant 0 : i32
    %c0_i32_0 = arith.constant 0 : i32
    %c0_i32_1 = arith.constant 0 : i32
    return %c0_i32, %c0_i32_0 : i32, i32
  }
  func.func @transform_9(%arg0: i32, %arg1: i32) -> (i32, i32) {
    %c0_i32 = arith.constant 0 : i32
    %c0_i32_0 = arith.constant 0 : i32
    %c0_i32_1 = arith.constant 0 : i32
    return %c0_i32, %c0_i32_0 : i32, i32
  }
  func.func @transform_10(%arg0: i32, %arg1: i32) -> (i32, i32) {
    %c0_i32 = arith.constant 0 : i32
    %c0_i32_0 = arith.constant 0 : i32
    %c0_i32_1 = arith.constant 0 : i32
    return %c0_i32, %c0_i32_0 : i32, i32
  }
  func.func @transform_11(%arg0: i32, %arg1: i32) -> (i32, i32) {
    %c0_i32 = arith.constant 0 : i32
    %c0_i32_0 = arith.constant 0 : i32
    %c0_i32_1 = arith.constant 0 : i32
    return %c0_i32, %c0_i32_0 : i32, i32
  }
  func.func @transform_12(%arg0: i32, %arg1: i32) -> (i32, i32) {
    %c0_i32 = arith.constant 0 : i32
    %c0_i32_0 = arith.constant 0 : i32
    %c0_i32_1 = arith.constant 0 : i32
    return %c0_i32, %c0_i32_0 : i32, i32
  }
  func.func @transform_13(%arg0: i32, %arg1: i32) -> (i32, i32) {
    %c0_i32 = arith.constant 0 : i32
    %c0_i32_0 = arith.constant 0 : i32
    %c0_i32_1 = arith.constant 0 : i32
    return %c0_i32, %c0_i32_0 : i32, i32
  }
  func.func @transform_14(%arg0: i32, %arg1: i32) -> (i32, i32, i32) {
    %c0_i32 = arith.constant 0 : i32
    %c0_i32_0 = arith.constant 0 : i32
    %c0_i32_1 = arith.constant 0 : i32
    return %arg0, %c0_i32, %c0_i32_0 : i32, i32, i32
  }
}

</mosaic_0001>

<bundles_post_ra>
// kernel: albert_model.5
= control target key start
LH: loop header
LB: loop body
LE: loop exit
PB: predicated region body
PF: predicated region fallthrough
CT: control target
= control target key end

     0   :  { %s357_s12 = smov 0   ;;  %s383_s0 = inlined_call_operand.vmem [shape: f32[2,8,32], index: 0, kind: input, shape index: {}]   ;;  %s384_s1 = inlined_call_operand.vmem [shape: bf16[32,64], index: 1, kind: input, shape index: {}]   ;;  %s385_s2 = inlined_call_operand.vmem [shape: f32[1,64], index: 2, kind: input, shape index: {}]   ;;  %s386_s3 = inlined_call_operand.vmem [shape: f32[2,8,64], index: 3, kind: output, shape index: {}]  }
   0x1 LB: > { %s291_s13 = sadd.s32 4294967295, %s333_s12   ;;  %p295_p0 = scmp.ge.s32.totalorder %s333_s12, 1  ;;  %s333_s12 = sphi %s357_s12, %s13_s12  }
   0x2   : > { %p136_p1 = scmp.lt.s32.totalorder %s333_s12, 3 }
   0x4   : > { %p137_p2 = pnand %p295_p0, %p136_p1 }
   0x5   : > { %p158_p3 = scmp.lt.s32.totalorder (!%p137_p2), %s291_s13, 1 }
   0x6   : > { %140 = sbr.rel (%p137_p2) target bundleno = 219 (0xdb), region = 32 }
   0xb   : > { %v325_v0 = vld [vmem:[%s384_s1 + $0x8] sm:$0xff]   ;;  %v335_v1 = vmov 0.0   ;;  %v326_v2 = vld [vmem:[%s384_s1] sm:$0xff]   ;;  %vm336_vm0 = vmmov 0   ;;  %s388_s13 = smov (!%p158_p3, %s291_s13), 1  ;;  %vm192_vm1 = vcmask 261120  }
   0xc   : > { %307 = vmatprep.subr.bf16.mxu0 %v335_v1  ;;  %311 = vmatprep.mubr.msk.bf16.mxu0 %vm336_vm0, %v335_v1  ;;  %s296_s18 = sshll.u32 %s388_s13, 3  ;;  %v298_v5 = vld [vmem:[%s385_s2] ss:$0 sm:$0xff]  ;;  %vm236_vm2 = vcmask 523264  }
   0xd   : > { %308 = vmatpush3.bf16.msra.mxu0 %v325_v0  ;;  %s161_s21 = scalar_lea.vmem %s383_s0, %s296_s18  ;;  %s165_s26 = scalar_lea.vmem %s386_s3, %s296_s18 }
   0xe   : > { %309 = vmatprep.subr.bf16.mxu0 %v335_v1  ;;  %v167_v3 = vld [vmem:[%s161_s21] sm:$0xff] }
   0xf   : > { %v168_v4 = vpack.c.bf16 %v167_v3, %v167_v3 }
  0x11   : > { %310 = vmatpush3.bf16.msra.mxu0 %v326_v2 }
  0x14   : > { %312 = vmatmul.mubr.msk.bf16.vlgmr.msra.gmra.mxu0 %vm192_vm1, %v168_v4 }
  0xd4   : > { %v230_v6 = vpop.f32.mrf.mxu0 }
  0xd5   : > { %v231_v7 = vadd.f32 %v298_v5, %v230_v6 }
  0xd6   : > { %v313_v8 = vpop.f32.mrf.mxu0 }
  0xd7   : > { %237 = vst.msk [vmem:[%s165_s26] sm:$0xff] %vm236_vm2, %v231_v7 }
  0xd8   : > { %v233_v9 = vpop.f32.mrf.mxu0 }
  0xda   : > { %v314_v10 = vpop.f32.mrf.mxu0 }
  0xdb PF: > { %s13_s12 = sadd.s32 1, %s333_s12  }
  0xdc   : > { %p10_p4 = scmp.ge.s32.totalorder %s13_s12, 4  }
  0xde   :  { %12 = sbr.rel (!%p10_p4) target bundleno = 1 (0x1), region = 62 }

// kernel: albert_model.4
= control target key start
LH: loop header
LB: loop body
LE: loop exit
PB: predicated region body
PF: predicated region fallthrough
CT: control target
= control target key end

     0   :  { %s734_s0 = inlined_call_operand.vmem [shape: s32[16], index: 0, kind: input, shape index: {}]   ;;  %s735_s1 = inlined_call_operand.vmem [shape: s32[2,8,1], index: 1, kind: input, shape index: {}]   ;;  %s736_s2 = inlined_call_operand.vmem [shape: f32[64,32], index: 2, kind: input, shape index: {}]   ;;  %s737_s3 = inlined_call_operand.vmem [shape: f32[2,32], index: 3, kind: input, shape index: {}]   ;;  %s738_s4 = inlined_call_operand.vmem [shape: f32[1,32], index: 4, kind: input, shape index: {}]   ;;  %s739_s5 = inlined_call_operand.vmem [shape: f32[1,32], index: 5, kind: input, shape index: {}]   ;;  %s740_s6 = inlined_call_operand.vmem [shape: f32[128,32], index: 6, kind: input, shape index: {}]   ;;  %s741_s7 = inlined_call_operand.vmem [shape: f32[2,8,32], index: 7, kind: output, shape index: {}]  }
   0x1   :  { %s12_s26 = sshll.u32 %s734_s0, 4  ;;  %s13_s26 = int_to_ptr.vmem [resolvable:$true] %s12_s26 }
   0x2   :  { %s579_s27 = scalar_lea.vmem %s13_s26, 16  ;;  %p584_p1 = scmp.lt.s32.totalorder %s13_s26, %s13_s26 }
   0x3   :  { %p580_p0 = scmp.ne.s32.totalorder %s13_s26, %s579_s27  ;;  %p585_p2 = scmp.lt.s32.totalorder %s579_s27, %s579_s27 }
   0x5   :  { %p586_p3 = por %p585_p2, %p584_p1 }
   0x7   :  { %p587_p4 = pnand %p586_p3, %p580_p0 }
   0x9   :  { %590 = shalt.err (!%p587_p4)  }
   0xa   :  { %s627_s28 = smov [#allocation5]  }
   0xb   :  { %15 = dma.vmem_to_smem %s13_s26, 16, %s627_s28, [#allocation4] }
   0xc   :  { %607 = dma.done.wait [#allocation4], 16 }
   0xd   :  { %608 = vsyncadd [#allocation4], 4294967280 }
   0xe   :  { %17 = sfence }
   0xf   :  { %s672_s29 = smov 0   ;;  %s674_s30 = smov 0  }
  0x10   :  { %s676_s8 = smov 0  }
  0x11 LB: > { %s35_s0 = sadd.s32 1, %s617_s30  ;;  %p524_p5 = scmp.ge.s32.totalorder %s621_s8, 1  ;;  %s621_s8 = sphi %s676_s8, %s23_s8   ;;  %s617_s30 = sphi %s674_s30, %s743_s30   ;;  %s613_s29 = sphi %s672_s29, %s742_s29  }
  0x12   : > { %p37_p6 = scmp.ge.s32.totalorder %s35_s0, 2  ;;  %p222_p7 = scmp.lt.s32.totalorder %s621_s8, 3 }
  0x14   : > { %s745_s0 = smov (%p37_p6, %s35_s0), 0  ;;  %p223_p8 = pnand %p524_p5, %p222_p7 }
  0x15   : > { %p258_p9 = scmp.lt.s32.totalorder (!%p223_p8), %s613_s29, 1  ;;  %s527_s9 = sshll.u32 (!%p223_p8), %s613_s29, 3 }
  0x16   : > { %226 = sbr.rel (%p223_p8) target bundleno = 360 (0x168), region = 40  ;;  %s623_s17 = smov (!%p223_p8), 0  }
  0x1b   : > { %s747_s29 = smov (!%p258_p9, %s613_s29), 1 }
  0x1c   : > { %s525_s10 = sshll.u32 %s747_s29, 3 }
  0x1d   : > { %s264_s13 = scalar_lea.vmem %s735_s1, %s525_s10  ;;  %s701_s16 = scalar_lea.vmem %s741_s7, %s525_s10 }
  0x1e LB: >> { %s284_s18 = sadd.s32 %s625_s17, %s527_s9  ;;  %s291_s23 = scalar_lea.vmem [#allocation2], %s625_s17  ;;  %s625_s17 = sphi %s623_s17, %s283_s17  }
  0x1f   : >> { %s285_s19 = sld [smem:[#allocation5 + %s284_s18]] }
  0x25   : >> { %p286_p10 = scmp.gt.s32.totalorder %s285_s19, 0  ;;  %p528_p11 = scmp.lt.s32.totalorder %s285_s19, 127 }
  0x27   : >> { %s749_s19 = smov (!%p286_p10, %s285_s19), 0 }
  0x28   : >> { %s751_s19 = smov (!%p528_p11, %s749_s19), 127 }
  0x29   : >> { %s290_s22 = scalar_lea.vmem %s740_s6, %s751_s19 }
  0x2a   : >> { %v310_v0 = vld [vmem:[%s290_s22] sm:$0x1] }
  0x2b   : >> { %311 = vst [vmem:[%s291_s23] sm:$0x1] %v310_v0 }
  0x2c   : >> { %337 = vsyncadd [#allocation3], 16  ;;  %s283_s17 = sadd.s32 1, %s625_s17  }
  0x2d   : >> { %p280_p12 = scmp.ge.s32.totalorder %s283_s17, 8  }
  0x2f   : > { %282 = sbr.rel (!%p280_p12) target bundleno = 30 (0x1e), region = 122 }
  0x34   : > { %609 = dma.done.wait [#allocation3], 128 }
  0x35   : > { %610 = vsyncadd [#allocation3], 4294967168  ;;  %v628_v1 = vmov 0   ;;  %v344_v2 = vld [vmem:[%s264_s13] sm:$0xff]  ;;  %vm373_vm4 = vcmask 261120  }
  0x36   : > { %576 = vset.pattern.permute.xlu0 %v628_v1  ;;  %vm345_vm0 = vcmp.eq.s32.totalorder %v344_v2, 0  ;;  %vm358_vm1 = vcmp.eq.s32.totalorder %v344_v2, 1  ;;  %v341_v5 = vld [vmem:[#allocation2] sm:$0xff] }
  0x37   : > { %v347_v3 = vsel %vm345_vm0, 1, %v628_v1  ;;  %v360_v4 = vsel %vm358_vm1, 1, %v628_v1  ;;  %v342_v6 = vld [vmem:[%s736_s2] sm:$0xff] }
  0x38   : > { %349 = vperm.xlu0 %576, %v347_v3   ;;  %v533_v7 = vld [vmem:[%s737_s3] ss:$0 sm:$0xff]  ;;  %v343_v9 = vadd.f32 %v342_v6, %v341_v5  ;;  %v534_v11 = vld [vmem:[%s737_s3 + $0x1] ss:$0 sm:$0xff] }
  0x39   : > { %v535_v29 = vld [vmem:[%s738_s4] ss:$0 sm:$0xff] }
  0x3a   : > { %v536_v31 = vld [vmem:[%s739_s5] ss:$0 sm:$0xff] }
  0x3c   : > { %362 = vperm.xlu0 %576, %v360_v4  }
  0xb3   : > { %v350_v8 = vpop.permute.xlu0 %349 }
  0xb4   : > { %vm351_vm2 = vcmp.eq.s32.totalorder %v350_v8, 1 }
  0xb5   : > { %v356_v10 = vsel %vm351_vm2, %v533_v7, 0.0 }
  0xb6   : > { %v357_v13 = vadd.f32 %v356_v10, %v343_v9 }
  0xb7   : > { %v363_v12 = vpop.permute.xlu0 %362 }
  0xb8   : > { %vm364_vm3 = vcmp.eq.s32.totalorder %v363_v12, 1 }
  0xb9   : > { %v369_v14 = vsel %vm364_vm3, %v534_v11, 0.0 }
  0xba   : > { %v370_v15 = vadd.f32 %v369_v14, %v357_v13 }
  0xbc   : > { %v374_v16 = vsel %vm373_vm4, %v370_v15, 0.0  ;;  %v377_v17 = vmul.f32 %v370_v15, %v370_v15 }
  0xbd   : > { %375 = vadd.xlane.f32.xlu1 %v374_v16 }
  0xbe   : > { %v378_v18 = vsel %vm373_vm4, %v377_v17, 0.0 }
  0xc1   : > { %379 = vadd.xlane.f32.xlu1 %v378_v18 }
 0x146   : > { %v376_v19 = vpop.xlane.xlu1 %375 }
 0x147   : > { %v382_v20 = vmul.f32 0.03125, %v376_v19 }
 0x149   : > { %v384_v22 = vmul.f32 %v382_v20, %v382_v20  ;;  %v387_v27 = vsub.f32 %v370_v15, %v382_v20 }
 0x14a   : > { %v380_v21 = vpop.xlane.xlu1 %379 }
 0x14b   : > { %v383_v23 = vmul.f32 0.03125, %v380_v21 }
 0x14d   : > { %v385_v24 = vsub.f32 %v383_v23, %v384_v22 }
 0x14f   : > { %v386_v25 = vmax.f32 %v385_v24, 0.0 }
 0x151   : > { %v388_v26 = vadd.f32 1e-12, %v386_v25 }
 0x153   : > { %577 = vrsqrt.f32 %v388_v26 }
 0x160   : > { %v578_v28 = vpop.eup %577 }
 0x161   : > { %v390_v30 = vmul.f32 %v578_v28, %v387_v27 }
 0x163   : > { %v397_v32 = vmul.f32 %v535_v29, %v390_v30 }
 0x165   : > { %v404_v33 = vadd.f32 %v536_v31, %v397_v32 }
 0x167   : > { %405 = vst.msk [vmem:[%s701_s16] sm:$0xff] %vm373_vm4, %v404_v33 }
 0x168 PF: > { %s23_s8 = sadd.s32 1, %s621_s8   ;;  %s742_s29 = smov %s617_s30 }
 0x169   : > { %p20_p13 = scmp.ge.s32.totalorder %s23_s8, 4   ;;  %s743_s30 = smov %s745_s0 }
 0x16b   :  { %22 = sbr.rel (!%p20_p13) target bundleno = 17 (0x11), region = 133 }
 0x170   :  { %431 = vsyncmov [#allocation3] }
 0x173   :  { %s432_s13 = vpop.sfrf %431 }
 0x174   :  { %p539_p0 = scmp.ne.s32.totalorder %s432_s13, 0 }
 0x176   :  { %436 = shalt.err (%p539_p0)  }

// kernel: albert_model.7
= control target key start
LH: loop header
LB: loop body
LE: loop exit
PB: predicated region body
PF: predicated region fallthrough
CT: control target
= control target key end

     0   :  { %v172_v1 = vmov 0.0   ;;  %vm173_vm0 = vmmov 0   ;;  %s216_s0 = inlined_call_operand.vmem [shape: f32[2,64], index: 0, kind: input, shape index: {}]   ;;  %s217_s1 = inlined_call_operand.vmem [shape: bf16[64,64], index: 1, kind: input, shape index: {}]   ;;  %s218_s2 = inlined_call_operand.vmem [shape: f32[1,64], index: 2, kind: input, shape index: {}]   ;;  %s219_s3 = inlined_call_operand.hbm [shape: f32[2,64], index: 3, kind: output, shape index: {}]  }
   0x1   :  { %v144_v0 = vld [vmem:[%s217_s1 + $0x18] sm:$0xff]   ;;  %129 = vmatprep.subr.bf16.mxu0 %v172_v1  ;;  %v145_v2 = vld [vmem:[%s217_s1 + $0x10] sm:$0xff]   ;;  %137 = vmatprep.mubr.msk.bf16.mxu0 %vm173_vm0, %v172_v1 }
   0x2   :  { %130 = vmatpush3.bf16.msra.mxu0 %v144_v0 }
   0x3   :  { %131 = vmatprep.subr.bf16.mxu0 %v172_v1 }
   0x4   :  { %8 = vsyncpa [#allocation3], 0  ;;  %v146_v3 = vld [vmem:[%s217_s1 + $0x8] sm:$0xff]   ;;  %v147_v4 = vld [vmem:[%s217_s1] sm:$0xff]   ;;  %vm57_vm1 = vcmask 523264   ;;  %s174_s1 = smov [#allocation2]  }
   0x5   :  { %v16_v5 = vld [vmem:[%s216_s0] sm:$0x3]  ;;  %s110_s24 = sshll.u32 %s174_s1, 4  ;;  %vm102_vm2 = vcmask 517120   ;;  %s111_s24 = int_to_ptr.vmem [resolvable:$true] %s110_s24 }
   0x6   :  { %132 = vmatpush3.bf16.msra.mxu0 %v145_v2  ;;  %v17_v6 = vpack.c.bf16 %v16_v5, %v16_v5  ;;  %v118_v7 = vld [vmem:[%s218_s2] ss:$0 sm:$0xff]  ;;  %s150_s0 = scalar_lea.vmem %s111_s24, 32  ;;  %p155_p1 = scmp.lt.s32.totalorder %s111_s24, %s111_s24 }
   0x7   :  { %133 = vmatprep.subr.bf16.mxu0 %v172_v1  ;;  %p151_p0 = scmp.ne.s32.totalorder %s111_s24, %s150_s0  ;;  %p156_p2 = scmp.lt.s32.totalorder %s150_s0, %s150_s0 }
   0x9   :  { %p157_p3 = por %p156_p2, %p155_p1 }
   0xa   :  { %134 = vmatpush3.bf16.msra.mxu0 %v146_v3 }
   0xb   :  { %135 = vmatprep.subr.bf16.mxu0 %v172_v1  ;;  %p158_p4 = pnand %p157_p3, %p151_p0 }
   0xe   :  { %136 = vmatpush3.bf16.msra.mxu0 %v147_v4 }
  0x11   :  { %138 = vmatmul.mubr.msk.bf16.vlgmr.msra.gmra.mxu0 %vm57_vm1, %v17_v6 }
  0xd1   :  { %v95_v8 = vpop.f32.mrf.mxu0 }
  0xd2   :  { %v96_v9 = vadd.f32 %v118_v7, %v95_v8 }
  0xd3   :  { %v139_v10 = vpop.f32.mrf.mxu0 }
  0xd4   :  { %148 = vtanh.f32 %v96_v9 }
  0xd5   :  { %v98_v11 = vpop.f32.mrf.mxu0 }
  0xd7   :  { %v140_v12 = vpop.f32.mrf.mxu0 }
  0xe1   :  { %v149_v13 = vpop.eup %148 }
  0xe2   :  { %103 = vst.msk [vmem:[#allocation2] sm:$0x3] %vm102_vm2, %v149_v13 }
  0xe3   :  { %161 = shalt.err (!%p158_p4)
}
  0xe4   :  { %113 = dma.vmem_to_hbm [thread:$0]  %s111_s24, 32, %s219_s3, [#allocation3]  }
  0xe5   :  { %170 = dma.done.wait [#allocation3], 32  }
  0xe6   :  { %171 = vsyncadd [#allocation3], 4294967264 }
  0xe7   :  { %117 = vsyncpa [#allocation3], 1 }

// kernel: albert_model.6
= control target key start
LH: loop header
LB: loop body
LE: loop exit
PB: predicated region body
PF: predicated region fallthrough
CT: control target
= control target key end

     0   :  { %s1913_s29 = smov 0   ;;  %s1915_s30 = smov 0   ;;  %s2178_s0 = inlined_call_operand.vmem [shape: f32[2,8,64], index: 0, kind: input, shape index: {}]   ;;  %s2179_s1 = inlined_call_operand.vmem [shape: f32[2,1,8], index: 1, kind: input, shape index: {}]   ;;  %s2180_s2 = inlined_call_operand.vmem [shape: bf16[64,192], index: 2, kind: input, shape index: {}]   ;;  %s2181_s3 = inlined_call_operand.vmem [shape: f32[1,192], index: 3, kind: input, shape index: {}]   ;;  %s2182_s4 = inlined_call_operand.vmem [shape: bf16[64,64], index: 4, kind: input, shape index: {}]   ;;  %s2183_s5 = inlined_call_operand.vmem [shape: f32[1,64], index: 5, kind: input, shape index: {}]   ;;  %s2184_s6 = inlined_call_operand.vmem [shape: f32[1,64], index: 6, kind: input, shape index: {}]   ;;  %s2185_s7 = inlined_call_operand.vmem [shape: f32[1,64], index: 7, kind: input, shape index: {}]   ;;  %s2186_s8 = inlined_call_operand.vmem [shape: bf16[64,128], index: 8, kind: input, shape index: {}]   ;;  %s2187_s9 = inlined_call_operand.vmem [shape: f32[1,128], index: 9, kind: input, shape index: {}]   ;;  %s2188_s10 = inlined_call_operand.vmem [shape: bf16[128,64], index: 10, kind: input, shape index: {}]   ;;  %s2189_s11 = inlined_call_operand.vmem [shape: f32[1,64], index: 11, kind: input, shape index: {}]   ;;  %s2190_s12 = inlined_call_operand.vmem [shape: f32[1,64], index: 12, kind: input, shape index: {}]   ;;  %s2191_s13 = inlined_call_operand.vmem [shape: f32[1,64], index: 13, kind: input, shape index: {}]   ;;  %s2192_s14 = inlined_call_operand.vmem [shape: f32[2,8,64], index: 14, kind: output, shape index: {}]  }
   0x1   :  { %s1917_s15 = smov 0   ;;  %s1919_s16 = smov 0  }
   0x2   :  { %s1921_s17 = smov 0  }
   0x3 LB: > { %2194 = sst [smem:[#allocation3_spill]] %s1822_s16  ;;  %s33_s18 = sadd.s32 1, %s1818_s15  ;;  %s1826_s17 = sphi %s1921_s17, %s24_s17   ;;  %s1822_s16 = sphi %s1919_s16, %s2199_s16   ;;  %s1818_s15 = sphi %s1917_s15, %s2201_s15   ;;  %s1814_s30 = sphi %s1915_s30, %s2197_s30   ;;  %s1810_s29 = sphi %s1913_s29, %s2200_s29  }
   0x4   : > { %s36_s19 = sadd.s32 1, %s1822_s16  ;;  %p34_p0 = scmp.ge.s32.totalorder %s33_s18, 2 }
   0x5   : > { %p1512_p1 = scmp.ge.s32.totalorder %s1826_s17, 1  ;;  %p431_p2 = scmp.lt.s32.totalorder %s1826_s17, 5 }
   0x6   : > { %s2203_s18 = smov (%p34_p0, %s33_s18), 0  ;;  %s2205_s19 = smov (!%p34_p0, %s36_s19), %s1822_s16 }
   0x7   : > { %2195 = sst [smem:[#allocation4_spill]] %s2203_s18  ;;  %p432_p3 = pnand %p1512_p1, %p431_p2 }
   0x8   : > { %p38_p4 = scmp.ge.s32.totalorder %s2205_s19, 2  ;;  %p478_p5 = scmp.lt.s32.totalorder (!%p432_p3), %s1814_s30, 1 }
   0x9   : > { %435 = sbr.rel (%p432_p3) target bundleno = 2197 (0x895), region = 76  ;;  %p1515_p6 = scmp.ne.s32.totalorder (!%p432_p3), %s1810_s29, 0 }
   0xa   : > { %s2207_s19 = smov (%p38_p4, %s2205_s19), 0 }
   0xb   : > { %2196 = sst [smem:[#allocation5_spill]] %s2207_s19 }
   0xe   : > { %s2209_s30 = smov (!%p478_p5, %s1814_s30), 1  ;;  %493 = sbr.rel (%p1515_p6) target bundleno = 21 (0x15), region = 80 }
   0xf   : > { %s1513_s20 = sshll.u32 %s2209_s30, 3  ;;  %s484_s23 = scalar_lea.vmem %s2179_s1, %s2209_s30 }
  0x10   : > { %s481_s26 = scalar_lea.vmem %s2178_s0, %s1513_s20  ;;  %s1956_s18 = scalar_lea.vmem %s2192_s14, %s1513_s20 }
  0x13   : > { %v494_v0 = vld [vmem:[%s481_s26] sm:$0xff]  ;;  %vm495_vm0 = vcmask 523264  }
  0x14   : > { %496 = vst.msk [vmem:[#allocation2] sm:$0xff] %vm495_vm0, %v494_v0 }
  0x15 PF: > { %v1738_v1 = vld [vmem:[%s2180_s2 + $0x34] ss:$8 sps:$4 sm:$0xff]   ;;  %v1740_v2 = vld [vmem:[%s2180_s2 + $0x30] ss:$8 sps:$4 sm:$0xff]   ;;  %v1828_v3 = vmov 0   ;;  %vm560_vm1 = vcmask 523264   ;;  %v510_v12 = vlaneseq }
  0x16   : > { %596 = vmatprep.mubr.bf16.mxu1 %v1828_v3  ;;  %572 = vmatprep.subr.bf16.mxu1 %v1738_v1  ;;  %v1741_v4 = vld [vmem:[%s2180_s2 + $0x24] ss:$8 sps:$4 sm:$0xff]   ;;  %v1743_v5 = vld [vmem:[%s2180_s2 + $0x20] ss:$8 sps:$4 sm:$0xff]   ;;  %v1744_v6 = vld [vmem:[%s2180_s2 + $0x14] ss:$8 sps:$4 sm:$0xff]  }
  0x17   : > { %573 = vmatpush1.bf16.msra.mxu1 %v1740_v2  ;;  %v1746_v7 = vld [vmem:[%s2180_s2 + $0x10] ss:$8 sps:$4 sm:$0xff]   ;;  %v1747_v8 = vld [vmem:[%s2180_s2 + $0x4] ss:$8 sps:$4 sm:$0xff]   ;;  %v1749_v9 = vld [vmem:[%s2180_s2] ss:$8 sps:$4 sm:$0xff]  }
  0x18   : > { %574 = vmatprep.subr.bf16.mxu1 %v1741_v4  ;;  %v511_v13 = vshrl.u32 %v510_v12, 7  ;;  %v1829_v14 = vmov 0.0   ;;  %v508_v16 = vld [vmem:[%s2181_s3] sm:$0x3]  ;;  %vm1830_vm2 = vmmov 0   ;;  %s1831_s25 = smov 112  }
  0x19   : > { %1608 = vmatprep.subr.bf16.mxu0 %v1829_v14  ;;  %1610 = vmatprep.mubr.msk.bf16.mxu0 %vm1830_vm2, %v1829_v14  ;;  %s1832_s26 = smov 64   ;;  %s1833_s16 = smov 32   ;;  %vm610_vm3 = vcmask 130048   ;;  %vm681_vm4 = vcmask 1043456   ;;  %v1526_v41 = vld [vmem:[%s484_s23] ss:$0 sm:$0xff] }
  0x1a   : > { %v512_v15 = vsub.s32 0, %v511_v13  ;;  %s1834_s19 = smov 48   ;;  %s1835_s27 = smov 16   ;;  %v516_v24 = vsub.s32 1, %v511_v13  ;;  %vm665_vm5 = vcmask 64512   ;;  %vm1075_vm6 = vcmask 261120  }
  0x1b   : > { %575 = vmatpush1.bf16.msra.mxu1 %v1743_v5  ;;  %v1982_v10 = vld [vmem:[#allocation2] sm:$0xff]  ;;  %s1836_s28 = smov 96   ;;  %s1837_s21 = smov 80   ;;  %vm1077_vm7 = vcmask 392192  }
  0x1c   : > { %576 = vmatprep.subr.bf16.mxu1 %v1744_v6  ;;  %v499_v11 = vpack.c.bf16 %v1982_v10, %v1982_v10  ;;  %v513_v17 = vrot.slane %v508_v16, %v512_v15  ;;  %v517_v25 = vrot.slane %v508_v16, %v516_v24 }
  0x1f   : > { %577 = vmatpush1.bf16.msra.mxu1 %v1746_v7 }
  0x20   : > { %578 = vmatprep.subr.bf16.mxu1 %v1747_v8 }
  0x23   : > { %579 = vmatpush1.bf16.msra.mxu1 %v1749_v9 }
  0x24   : > { %1596 = vmatprep.subr.bf16.mxu1 %v1829_v14 }
  0x26   : > { %1524 = vmatmul.mubr.msk.bf16.vlgmr.msra.gmra.mxu1 %vm560_vm1, %v499_v11 }
  0x27   : > { %1598 = vmatprep.mubr.msk.bf16.mxu1 %vm1830_vm2, %v1829_v14 }
  0xe6   : > { %v598_v18 = vpop.f32.mrf.mxu1 }
  0xe7   : > { %v599_v19 = vadd.f32 %v598_v18, %v513_v17 }
  0xe8   : > { %v600_v20 = vpop.f32.mrf.mxu1 }
  0xe9   : > { %v605_v21 = vpack.c.bf16 %v599_v19, %v599_v19  ;;  %v601_v27 = vadd.f32 %v600_v20, %v517_v25 }
  0xea   : > { %v602_v22 = vpop.f32.mrf.mxu1 }
  0xeb   : > { %725 = vrot.lane.b32.xlu1 %v605_v21, %s1831_s25  ;;  %608 = vrot.lane.b32.xlu0 %v605_v21, %s1832_s26  ;;  %v2004_v31 = vpack.c.bf16 %v601_v27, %v601_v27 }
  0xec   : > { %v603_v23 = vpop.f32.mrf.mxu1 }
  0xed   : > { %v683_v33 = vsel %vm681_vm4, %v2004_v31, 0 }
  0xef   : > { %840 = vrot.lane.b32.xlu1 %v605_v21, %s1833_s16  ;;  %727 = vrot.lane.b32.xlu0 %v605_v21, %s1834_s19 }
  0xf3   : > { %952 = vrot.lane.b32.xlu1 %v605_v21, %s1835_s27  ;;  %838 = vrot.lane.b32.xlu0 %v605_v21, %s1836_s28 }
  0xf7   : > { %950 = vrot.lane.b32.xlu0 %v605_v21, %s1837_s21 }
 0x15d   : > { %v609_v26 = vpop.permute.xlu0 %608  ;;  %v726_v29 = vpop.permute.xlu1 %725 }
 0x15e   : > { %v615_v28 = vsel %vm610_vm3, %v609_v26, 0 }
 0x15f   : > { %1597 = vmatpush3.bf16.xpose.msra.mxu1 %v615_v28 }
 0x160   : > { %1602 = vmatprep.subr.bf16.mxu1 %v1829_v14 }
 0x161   : > { %v728_v30 = vpop.permute.xlu0 %727  ;;  %v841_v34 = vpop.permute.xlu1 %840 }
 0x162   : > { %v733_v32 = vsel %vm610_vm3, %v728_v30, 0  ;;  %v846_v35 = vsel %vm610_vm3, %v841_v34, 0 }
 0x163   : > { %1609 = vmatpush3.bf16.xpose.msra.mxu0 %v733_v32 }
 0x164   : > { %1620 = vmatprep.subr.bf16.mxu0 %v1829_v14 }
 0x165   : > { %v953_v36 = vpop.permute.xlu1 %952  ;;  %v839_v37 = vpop.permute.xlu0 %838 }
 0x166   : > { %1599 = vmatmul.mubr.msk.bf16.vlgmr.msra.gmra.mxu1 %vm610_vm3, %v605_v21  ;;  %v958_v38 = vsel %vm610_vm3, %v953_v36, 0 }
 0x167   : > { %1603 = vmatpush3.bf16.msra.mxu1 %v683_v33  ;;  %1604 = vmatprep.mubr.msk.bf16.mxu1 %vm1830_vm2, %v1829_v14 }
 0x168   : > { %1614 = vmatprep.subr.bf16.mxu1 %v1829_v14 }
 0x169   : > { %v951_v39 = vpop.permute.xlu0 %950 }
 0x16a   : > { %1611 = vmatmul.mubr.msk.bf16.vlgmr.msra.gmra.mxu0 %vm610_vm3, %v726_v29 }
 0x16b   : > { %1621 = vmatpush3.bf16.xpose.msra.mxu0 %v846_v35  ;;  %1622 = vmatprep.mubr.msk.bf16.mxu0 %vm1830_vm2, %v1829_v14 }
 0x16c   : > { %1632 = vmatprep.subr.bf16.mxu0 %v1829_v14 }
 0x172   : > { %1623 = vmatmul.mubr.msk.bf16.vlgmr.msra.gmra.mxu0 %vm610_vm3, %v839_v37 }
 0x173   : > { %1633 = vmatpush3.bf16.xpose.msra.mxu0 %v958_v38  ;;  %1634 = vmatprep.mubr.msk.bf16.mxu0 %vm1830_vm2, %v1829_v14 }
 0x174   : > { %1644 = vmatprep.subr.bf16.mxu0 %v1829_v14 }
 0x17a   : > { %1635 = vmatmul.mubr.msk.bf16.vlgmr.msra.gmra.mxu0 %vm610_vm3, %v951_v39 }
 0x17b   : > { %1652 = vmatprep.mubr.msk.bf16.mxu0 %vm1830_vm2, %v1829_v14 }
 0x226   : > { %v651_v40 = vpop.f32.mrf.mxu1 }
 0x227   : > { %v657_v42 = vmul.f32 0.25, %v651_v40 }
 0x228   : > { %v1600_v43 = vpop.f32.mrf.mxu1 }
 0x229   : > { %v664_v44 = vadd.f32 %v1526_v41, %v657_v42 }
 0x22a   : > { %v654_v45 = vpop.f32.mrf.mxu1  ;;  %v769_v46 = vpop.f32.mrf.mxu0 }
 0x22b   : > { %v775_v47 = vmul.f32 0.25, %v769_v46  ;;  %v666_v48 = vsel %vm665_vm5, %v664_v44, -inf }
 0x22c   : > { %667 = vmax.xlane.f32.xlu1 %v666_v48  ;;  %v1601_v49 = vpop.f32.mrf.mxu1  ;;  %v1612_v50 = vpop.f32.mrf.mxu0 }
 0x22d   : > { %v776_v51 = vadd.f32 %v1526_v41, %v775_v47 }
 0x22e   : > { %v772_v52 = vpop.f32.mrf.mxu0 }
 0x22f   : > { %v777_v53 = vsel %vm665_vm5, %v776_v51, -inf  ;;  %v1750_v52 = vld [vmem:[%s2182_s4 + $0x18] sm:$0xff]  }
 0x230   : > { %778 = vmax.xlane.f32.xlu0 %v777_v53  ;;  %v1613_v54 = vpop.f32.mrf.mxu0  ;;  %1645 = vmatpush3.bf16.msra.mxu0 %v1750_v52 }
 0x231   : > { %v1751_v54 = vld [vmem:[%s2182_s4 + $0x10] sm:$0xff]   ;;  %1646 = vmatprep.subr.bf16.mxu0 %v1829_v14 }
 0x232   : > { %v882_v55 = vpop.f32.mrf.mxu0 }
 0x233   : > { %v888_v56 = vmul.f32 0.25, %v882_v55 }
 0x234   : > { %v1624_v57 = vpop.f32.mrf.mxu0  ;;  %1647 = vmatpush3.bf16.msra.mxu0 %v1751_v54 }
 0x235   : > { %v889_v58 = vadd.f32 %v1526_v41, %v888_v56  ;;  %v1752_v57 = vld [vmem:[%s2182_s4 + $0x8] sm:$0xff]   ;;  %1648 = vmatprep.subr.bf16.mxu0 %v1829_v14 }
 0x236   : > { %v885_v59 = vpop.f32.mrf.mxu0 }
 0x237   : > { %v890_v60 = vsel %vm665_vm5, %v889_v58, -inf }
 0x238   : > { %891 = vmax.xlane.f32.xlu0 %v890_v60  ;;  %v1625_v61 = vpop.f32.mrf.mxu0  ;;  %1649 = vmatpush3.bf16.msra.mxu0 %v1752_v57 }
 0x239   : > { %1650 = vmatprep.subr.bf16.mxu0 %v1829_v14 }
 0x23a   : > { %v994_v62 = vpop.f32.mrf.mxu0 }
 0x23b   : > { %v1000_v63 = vmul.f32 0.25, %v994_v62 }
 0x23c   : > { %v1636_v0 = vpop.f32.mrf.mxu0 }
 0x23d   : > { %v1001_v1 = vadd.f32 %v1526_v41, %v1000_v63  ;;  %v1753_v0 = vld [vmem:[%s2182_s4] sm:$0xff]  }
 0x23e   : > { %v997_v2 = vpop.f32.mrf.mxu0  ;;  %1651 = vmatpush3.bf16.msra.mxu0 %v1753_v0 }
 0x23f   : > { %v1002_v3 = vsel %vm665_vm5, %v1001_v1, -inf  ;;  %1668 = vmatprep.subr.bf16.mxu0 %v1829_v14 }
 0x240   : > { %1003 = vmax.xlane.f32.xlu1 %v1002_v3  ;;  %v1637_v4 = vpop.f32.mrf.mxu0 }
 0x2b5   : > { %v668_v5 = vpop.xlane.xlu1 %667 }
 0x2b6   : > { %v669_v6 = vsub.f32 %v664_v44, %v668_v5 }
 0x2b8   : > { %v670_v7 = vmul.f32 1.442695, %v669_v6 }
 0x2b9   : > { %v779_v8 = vpop.xlane.xlu0 %778 }
 0x2ba   : > { %1766 = vpow2.f32 %v670_v7  ;;  %v780_v9 = vsub.f32 %v776_v51, %v779_v8 }
 0x2bc   : > { %v781_v11 = vmul.f32 1.442695, %v780_v9 }
 0x2be   : > { %1768 = vpow2.f32 %v781_v11 }
 0x2c1   : > { %v892_v12 = vpop.xlane.xlu0 %891 }
 0x2c2   : > { %v893_v13 = vsub.f32 %v889_v58, %v892_v12 }
 0x2c4   : > { %v894_v15 = vmul.f32 1.442695, %v893_v13  ;;  %v1534_v13 = vld [vmem:[%s2183_s5] ss:$0 sm:$0xff] }
 0x2c6   : > { %1770 = vpow2.f32 %v894_v15 }
 0x2c7   : > { %v1767_v16 = vpop.eup %1766 }
 0x2c8   : > { %v672_v17 = vsel %vm665_vm5, %v1767_v16, 0.0 }
 0x2c9   : > { %673 = vadd.xlane.f32.xlu0 %v672_v17  ;;  %v1004_v22 = vpop.xlane.xlu1 %1003 }
 0x2ca   : > { %v1005_v23 = vsub.f32 %v1001_v1, %v1004_v22 }
 0x2cb   : > { %v1769_v18 = vpop.eup %1768 }
 0x2cc   : > { %v783_v19 = vsel %vm665_vm5, %v1769_v18, 0.0  ;;  %v1006_v24 = vmul.f32 1.442695, %v1005_v23 }
 0x2cd   : > { %784 = vadd.xlane.f32.xlu1 %v783_v19 }
 0x2ce   : > { %1772 = vpow2.f32 %v1006_v24  ;;  %v1754_v24 = vld [vmem:[%s2186_s8 + $0x18] sm:$0xff]  }
 0x2d3   : > { %v1771_v20 = vpop.eup %1770 }
 0x2d4   : > { %v896_v21 = vsel %vm665_vm5, %v1771_v20, 0.0 }
 0x2d5   : > { %897 = vadd.xlane.f32.xlu0 %v896_v21 }
 0x2db   : > { %v1773_v25 = vpop.eup %1772 }
 0x2dc   : > { %v1008_v26 = vsel %vm665_vm5, %v1773_v25, 0.0 }
 0x2de   : > { %902 = vrot.lane.b32.xlu1 %v2004_v31, %s1836_s28 }
 0x2eb   : > { %790 = vrot.lane.b32.xlu0 %v2004_v31, %s1831_s25 }
 0x302   : > { %1009 = vadd.xlane.f32.xlu1 %v1008_v26  ;;  %v1757_v26 = vld [vmem:[%s2186_s8] sm:$0xff]  }
 0x313   : > { %1014 = vrot.lane.b32.xlu1 %v2004_v31, %s1837_s21 }
 0x352   : > { %v674_v27 = vpop.xlane.xlu0 %673 }
 0x353   : > { %1774 = vrcp.f32 %v674_v27 }
 0x356   : > { %v785_v28 = vpop.xlane.xlu1 %784 }
 0x357   : > { %1776 = vrcp.f32 %v785_v28 }
 0x35a   : > { %v903_v37 = vpop.permute.xlu1 %902 }
 0x35b   : > { %v908_v40 = vsel %vm681_vm4, %v903_v37, 0  ;;  %v1540_v37 = vld [vmem:[%s2184_s6] ss:$0 sm:$0xff] }
 0x35e   : > { %v898_v29 = vpop.xlane.xlu0 %897 }
 0x35f   : > { %1778 = vrcp.f32 %v898_v29 }
 0x360   : > { %v1775_v30 = vpop.eup %1774 }
 0x361   : > { %v676_v32 = vmul.f32 %v1775_v30, %v1767_v16 }
 0x362   : > { %v791_v33 = vpop.permute.xlu0 %790 }
 0x363   : > { %v796_v34 = vsel %vm681_vm4, %v791_v33, 0  ;;  %v677_v35 = vpack.c.bf16 %v676_v32, %v676_v32 }
 0x364   : > { %v1777_v36 = vpop.eup %1776 }
 0x365   : > { %1605 = vmatmul.mubr.msk.bf16.vlgmr.msra.gmra.mxu1 %vm665_vm5, %v677_v35  ;;  %v787_v31 = vmul.f32 %v1777_v36, %v1769_v18 }
 0x366   : > { %1615 = vmatpush3.bf16.msra.mxu1 %v796_v34  ;;  %1616 = vmatprep.mubr.msk.bf16.mxu1 %vm1830_vm2, %v1829_v14 }
 0x367   : > { %1626 = vmatprep.subr.bf16.mxu1 %v1829_v14  ;;  %v788_v38 = vpack.c.bf16 %v787_v31, %v787_v31 }
 0x36c   : > { %v1779_v39 = vpop.eup %1778 }
 0x36d   : > { %1617 = vmatmul.mubr.msk.bf16.vlgmr.msra.gmra.mxu1 %vm665_vm5, %v788_v38  ;;  %v900_v41 = vmul.f32 %v1779_v39, %v1771_v20  ;;  %v1541_v39 = vld [vmem:[%s2185_s7] ss:$0 sm:$0xff] }
 0x36e   : > { %1627 = vmatpush3.bf16.msra.mxu1 %v908_v40  ;;  %1628 = vmatprep.mubr.msk.bf16.mxu1 %vm1830_vm2, %v1829_v14 }
 0x36f   : > { %1638 = vmatprep.subr.bf16.mxu1 %v1829_v14  ;;  %v901_v42 = vpack.c.bf16 %v900_v41, %v900_v41 }
 0x375   : > { %1629 = vmatmul.mubr.msk.bf16.vlgmr.msra.gmra.mxu1 %vm665_vm5, %v901_v42 }
 0x376   : > { %1640 = vmatprep.mubr.msk.bf16.mxu1 %vm1830_vm2, %v1829_v14 }
 0x38b   : > { %v1010_v43 = vpop.xlane.xlu1 %1009 }
 0x38c   : > { %1780 = vrcp.f32 %v1010_v43  ;;  %v1758_v43 = vld [vmem:[%s2188_s10 + $0x38] sm:$0xff]  }
 0x38f   : > { %v1015_v44 = vpop.permute.xlu1 %1014 }
 0x390   : > { %v1020_v45 = vsel %vm681_vm4, %v1015_v44, 0  ;;  %v1759_v44 = vld [vmem:[%s2188_s10 + $0x30] sm:$0xff]  }
 0x391   : > { %1639 = vmatpush3.bf16.msra.mxu1 %v1020_v45  ;;  %v1760_v45 = vld [vmem:[%s2188_s10 + $0x28] sm:$0xff]  }
 0x392   : > { %1656 = vmatprep.subr.bf16.mxu1 %v1829_v14 }
 0x399   : > { %v1781_v46 = vpop.eup %1780 }
 0x39a   : > { %v1012_v47 = vmul.f32 %v1781_v46, %v1773_v25  ;;  %v1755_v25 = vld [vmem:[%s2186_s8 + $0x10] sm:$0xff]   ;;  %v1761_v46 = vld [vmem:[%s2188_s10 + $0x20] sm:$0xff]  }
 0x39c   : > { %v1013_v48 = vpack.c.bf16 %v1012_v47, %v1012_v47  ;;  %v1762_v47 = vld [vmem:[%s2188_s10 + $0x18] sm:$0xff]  }
 0x39e   : > { %1641 = vmatmul.mubr.msk.bf16.vlgmr.msra.gmra.mxu1 %vm665_vm5, %v1013_v48  ;;  %v1763_v48 = vld [vmem:[%s2188_s10 + $0x10] sm:$0xff]  }
 0x39f   : > { %1664 = vmatprep.mubr.msk.bf16.mxu1 %vm1830_vm2, %v1829_v14  ;;  %1657 = vmatpush3.bf16.msra.mxu1 %v1754_v24  ;;  %v1557_v24 = vld [vmem:[%s2190_s12] ss:$0 sm:$0xff] }
 0x3a0   : > { %1658 = vmatprep.subr.bf16.mxu1 %v1829_v14 }
 0x3a3   : > { %1659 = vmatpush3.bf16.msra.mxu1 %v1755_v25 }
 0x3a4   : > { %1660 = vmatprep.subr.bf16.mxu1 %v1829_v14 }
 0x425   : > { %v719_v49 = vpop.f32.mrf.mxu1 }
 0x427   : > { %v1606_v50 = vpop.f32.mrf.mxu1 }
 0x428   : > { %v1765_v50 = vld [vmem:[%s2188_s10] sm:$0xff]  }
 0x429   : > { %v722_v51 = vpop.f32.mrf.mxu1 }
 0x42a   : > { %v1542_v51 = vld [vmem:[%s2187_s9] ss:$0 sm:$0xff] }
 0x42b   : > { %v1607_v53 = vpop.f32.mrf.mxu1 }
 0x42d   : > { %v832_v55 = vpop.f32.mrf.mxu1 }
 0x42e   : > { %1063 = vrot.lane.b32.xlu0 %v832_v55, %s1835_s27 }
 0x42f   : > { %v1618_v56 = vpop.f32.mrf.mxu1 }
 0x431   : > { %v835_v58 = vpop.f32.mrf.mxu1 }
 0x433   : > { %v1619_v59 = vpop.f32.mrf.mxu1 }
 0x435   : > { %v944_v60 = vpop.f32.mrf.mxu1 }
 0x436   : > { %1067 = vrot.lane.b32.xlu1 %v944_v60, %s1833_s16 }
 0x437   : > { %v1630_v61 = vpop.f32.mrf.mxu1 }
 0x439   : > { %v947_v62 = vpop.f32.mrf.mxu1 }
 0x43b   : > { %v1631_v63 = vpop.f32.mrf.mxu1 }
 0x45e   : > { %v1056_v1 = vpop.f32.mrf.mxu1 }
 0x45f   : > { %1071 = vrot.lane.b32.xlu0 %v1056_v1, %s1834_s19 }
 0x460   : > { %v1642_v2 = vpop.f32.mrf.mxu1 }
 0x461   : > { %v1548_v2 = vld [vmem:[%s2189_s11] ss:$0 sm:$0xff] }
 0x462   : > { %v1059_v3 = vpop.f32.mrf.mxu1 }
 0x464   : > { %v1643_v4 = vpop.f32.mrf.mxu1 }
 0x4a0   : > { %v1064_v5 = vpop.permute.xlu0 %1063 }
 0x4a1   : > { %v1074_v7 = vsel %vm610_vm3, %v719_v49, %v1064_v5  ;;  %v1764_v49 = vld [vmem:[%s2188_s10 + $0x8] sm:$0xff]  }
 0x4a8   : > { %v1068_v6 = vpop.permute.xlu1 %1067 }
 0x4a9   : > { %v1076_v8 = vsel %vm1075_vm6, %v1074_v7, %v1068_v6 }
 0x4d1   : > { %v1072_v9 = vpop.permute.xlu0 %1071 }
 0x4d2   : > { %v1078_v11 = vsel %vm1077_vm7, %v1076_v8, %v1072_v9 }
 0x4d3   : > { %v1079_v12 = vpack.c.bf16 %v1078_v11, %v1078_v11 }
 0x4d5   : > { %1653 = vmatmul.mubr.msk.bf16.vlgmr.msra.gmra.mxu0 %vm560_vm1, %v1079_v12 }
 0x4d6   : > { %1684 = vmatprep.mubr.msk.bf16.mxu0 %vm1830_vm2, %v1829_v14  ;;  %1669 = vmatpush3.bf16.msra.mxu0 %v1758_v43 }
 0x4d7   : > { %1670 = vmatprep.subr.bf16.mxu0 %v1829_v14 }
 0x4da   : > { %1671 = vmatpush3.bf16.msra.mxu0 %v1759_v44 }
 0x4db   : > { %1672 = vmatprep.subr.bf16.mxu0 %v1829_v14 }
 0x4de   : > { %1673 = vmatpush3.bf16.msra.mxu0 %v1760_v45 }
 0x4df   : > { %1674 = vmatprep.subr.bf16.mxu0 %v1829_v14 }
 0x4e2   : > { %1675 = vmatpush3.bf16.msra.mxu0 %v1761_v46 }
 0x4e3   : > { %1676 = vmatprep.subr.bf16.mxu0 %v1829_v14 }
 0x4e6   : > { %1677 = vmatpush3.bf16.msra.mxu0 %v1762_v47 }
 0x4e7   : > { %1678 = vmatprep.subr.bf16.mxu0 %v1829_v14 }
 0x4ea   : > { %1679 = vmatpush3.bf16.msra.mxu0 %v1763_v48 }
 0x4eb   : > { %1680 = vmatprep.subr.bf16.mxu0 %v1829_v14 }
 0x4ee   : > { %1681 = vmatpush3.bf16.msra.mxu0 %v1764_v49 }
 0x4ef   : > { %1682 = vmatprep.subr.bf16.mxu0 %v1829_v14 }
 0x4f2   : > { %1683 = vmatpush3.bf16.msra.mxu0 %v1765_v50 }
 0x595   : > { %v1156_v15 = vpop.f32.mrf.mxu0 }
 0x596   : > { %v1157_v16 = vadd.f32 %v1534_v13, %v1156_v15 }
 0x597   : > { %v1654_v17 = vpop.f32.mrf.mxu0 }
 0x598   : > { %v1162_v18 = vadd.f32 %v1157_v16, %v1982_v10  ;;  %v1756_v10 = vld [vmem:[%s2186_s8 + $0x8] sm:$0xff]  }
 0x599   : > { %v1159_v19 = vpop.f32.mrf.mxu0  ;;  %1661 = vmatpush3.bf16.msra.mxu1 %v1756_v10  ;;  %v1558_v10 = vld [vmem:[%s2191_s13] ss:$0 sm:$0xff] }
 0x59a   : > { %v1165_v20 = vsel %vm560_vm1, %v1162_v18, 0.0  ;;  %v1168_v21 = vmul.f32 %v1162_v18, %v1162_v18  ;;  %1662 = vmatprep.subr.bf16.mxu1 %v1829_v14 }
 0x59b   : > { %1166 = vadd.xlane.f32.xlu1 %v1165_v20  ;;  %v1655_v22 = vpop.f32.mrf.mxu0 }
 0x59c   : > { %v1169_v23 = vsel %vm560_vm1, %v1168_v21, 0.0 }
 0x59d   : > { %1170 = vadd.xlane.f32.xlu0 %v1169_v23  ;;  %1663 = vmatpush3.bf16.msra.mxu1 %v1757_v26 }
 0x624   : > { %v1167_v27 = vpop.xlane.xlu1 %1166 }
 0x625   : > { %v1173_v28 = vmul.f32 0.015625, %v1167_v27 }
 0x626   : > { %v1171_v29 = vpop.xlane.xlu0 %1170 }
 0x627   : > { %v1175_v30 = vmul.f32 %v1173_v28, %v1173_v28  ;;  %v1174_v32 = vmul.f32 0.015625, %v1171_v29  ;;  %v1178_v36 = vsub.f32 %v1162_v18, %v1173_v28 }
 0x629   : > { %v1176_v33 = vsub.f32 %v1174_v32, %v1175_v30 }
 0x62b   : > { %v1177_v34 = vmax.f32 %v1176_v33, 0.0 }
 0x62d   : > { %v1179_v35 = vadd.f32 1e-12, %v1177_v34 }
 0x62f   : > { %1782 = vrsqrt.f32 %v1179_v35 }
 0x63c   : > { %v1783_v31 = vpop.eup %1782 }
 0x63d   : > { %v1181_v38 = vmul.f32 %v1783_v31, %v1178_v36 }
 0x63f   : > { %v1188_v40 = vmul.f32 %v1540_v37, %v1181_v38 }
 0x641   : > { %v1195_v41 = vadd.f32 %v1541_v39, %v1188_v40 }
 0x643   : > { %v1196_v42 = vpack.c.bf16 %v1195_v41, %v1195_v41 }
 0x645   : > { %1665 = vmatmul.mubr.msk.bf16.vlgmr.msra.gmra.mxu1 %vm560_vm1, %v1196_v42 }
 0x705   : > { %v1273_v52 = vpop.f32.mrf.mxu1 }
 0x706   : > { %v1274_v53 = vadd.f32 %v1542_v51, %v1273_v52 }
 0x707   : > { %v1666_v54 = vpop.f32.mrf.mxu1 }
 0x708   : > { %v1280_v55 = vmul.f32 0.044715, %v1274_v53  ;;  %v1279_v63 = vmul.f32 0.5, %v1274_v53 }
 0x709   : > { %v1276_v56 = vpop.f32.mrf.mxu1 }
 0x70a   : > { %v1281_v57 = vmul.f32 %v1280_v55, %v1274_v53 }
 0x70b   : > { %v1667_v58 = vpop.f32.mrf.mxu1 }
 0x70c   : > { %v1282_v59 = vmul.f32 %v1281_v57, %v1274_v53 }
 0x70e   : > { %v1283_v60 = vadd.f32 %v1282_v59, %v1274_v53 }
 0x710   : > { %v1284_v61 = vmul.f32 0.7978846, %v1283_v60 }
 0x712   : > { %1784 = vtanh.f32 %v1284_v61 }
 0x71f   : > { %v1785_v62 = vpop.eup %1784 }
 0x720   : > { %v1286_v0 = vadd.f32 1.0, %v1785_v62 }
 0x722   : > { %v1287_v14 = vmul.f32 %v1286_v0, %v1279_v63 }
 0x724   : > { %v1288_v1 = vpack.c.bf16 %v1287_v14, %v1287_v14 }
 0x726   : > { %1685 = vmatmul.mubr.bf16.vlgmr.msra.gmra.mxu0 %v1288_v1 }
 0x7e6   : > { %v1394_v3 = vpop.f32.mrf.mxu0 }
 0x7e7   : > { %v1395_v4 = vadd.f32 %v1548_v2, %v1394_v3 }
 0x7e8   : > { %v1686_v5 = vpop.f32.mrf.mxu0 }
 0x7e9   : > { %v1400_v6 = vadd.f32 %v1395_v4, %v1195_v41 }
 0x7ea   : > { %v1397_v7 = vpop.f32.mrf.mxu0 }
 0x7eb   : > { %v1403_v8 = vsel %vm560_vm1, %v1400_v6, 0.0  ;;  %v1406_v9 = vmul.f32 %v1400_v6, %v1400_v6 }
 0x7ec   : > { %1404 = vadd.xlane.f32.xlu0 %v1403_v8  ;;  %v1687_v11 = vpop.f32.mrf.mxu0 }
 0x7ed   : > { %v1407_v12 = vsel %vm560_vm1, %v1406_v9, 0.0 }
 0x7ee   : > { %1408 = vadd.xlane.f32.xlu1 %v1407_v12 }
 0x875   : > { %v1405_v13 = vpop.xlane.xlu0 %1404 }
 0x876   : > { %v1410_v15 = vmul.f32 0.015625, %v1405_v13 }
 0x877   : > { %v1409_v16 = vpop.xlane.xlu1 %1408 }
 0x878   : > { %v1412_v17 = vmul.f32 %v1410_v15, %v1410_v15  ;;  %v1411_v18 = vmul.f32 0.015625, %v1409_v16  ;;  %v1415_v22 = vsub.f32 %v1400_v6, %v1410_v15 }
 0x87a   : > { %v1413_v19 = vsub.f32 %v1411_v18, %v1412_v17 }
 0x87c   : > { %v1414_v20 = vmax.f32 %v1413_v19, 0.0 }
 0x87e   : > { %v1416_v21 = vadd.f32 1e-12, %v1414_v20 }
 0x880   : > { %1786 = vrsqrt.f32 %v1416_v21 }
 0x88d   : > { %v1787_v23 = vpop.eup %1786 }
 0x88e   : > { %v1418_v25 = vmul.f32 %v1787_v23, %v1415_v22 }
 0x890   : > { %v1425_v26 = vmul.f32 %v1557_v24, %v1418_v25 }
 0x892   : > { %v1432_v27 = vadd.f32 %v1558_v10, %v1425_v26 }
 0x894   : > { %1433 = vst.msk [vmem:[#allocation2] sm:$0xff] %vm560_vm1, %v1432_v27  ;;  %1434 = vst.msk [vmem:[%s1956_s18] sm:$0xff] %vm560_vm1, %v1432_v27 }
 0x895 PF: > { %s24_s17 = sadd.s32 1, %s1826_s17   ;;  %s2197_s30 = sld [smem:[#allocation3_spill]] }
 0x896   : > { %p21_p7 = scmp.ge.s32.totalorder %s24_s17, 6   ;;  %s2198_s28 = sld [smem:[#allocation4_spill]] }
 0x897   : > { %s2199_s16 = sld [smem:[#allocation5_spill]]  ;;  %s2200_s29 = smov %s1818_s15 }
 0x898   :  { %23 = sbr.rel (!%p21_p7) target bundleno = 3 (0x3), region = 113 }
 0x89c   : > { %s2201_s15 = smov %s2198_s28 }

</bundles_post_ra>
